<compile_context>
chip_gen: v7x
topology: tpu7x:2x2x1
jax: 0.10.0
libtpu: 0.0.40
codegen_flags: <defaults>
</compile_context>

<pallas_src>
import functools

import jax
import jax.numpy as jnp
from jax.experimental import pallas as pl
from jax.experimental.pallas import tpu as pltpu


_SELU_ALPHA = 1.6732632423543772
_SELU_SCALE = 1.0507009873554805


# ---------------------------------------------------------------------------
# Pallas kernel: tiled matmul + bias + (optional) SELU epilogue
# ---------------------------------------------------------------------------
def _linear_kernel(x_ref, w_ref, b_ref, o_ref, acc_ref, *, apply_selu):
    k = pl.program_id(2)

    @pl.when(k == 0)
    def _init():
        acc_ref[...] = jnp.zeros_like(acc_ref)

    acc_ref[...] += jnp.dot(x_ref[...], w_ref[...],
                            preferred_element_type=jnp.float32)

    @pl.when(k == pl.num_programs(2) - 1)
    def _finalize():
        y = acc_ref[...] + b_ref[...]                       # (tm,tn) + (1,tn) f32
        if apply_selu:
            # exp only of the clamped-negative branch (EUP); select on VPU.
            neg = _SELU_ALPHA * (jnp.exp(jnp.minimum(y, 0.0)) - 1.0)
            y = _SELU_SCALE * jnp.where(y > 0.0, y, neg)
        o_ref[...] = y.astype(o_ref.dtype)


def _round_up(x, m):
    return (x + m - 1) // m * m


def _pick_tile(total, candidates):
    for c in candidates:
        if c <= total and total % c == 0:
            return c
    return total


def fused_linear(x, w_oi, b, *, activation=None, out_dtype=jnp.bfloat16):
    """y = act(x @ w_oi.T + b); w_oi is torch Linear layout (out_f, in_f)."""
    M, K = x.shape
    N, K2 = w_oi.shape
    assert K == K2

    # bf16 at the boundary (MXU native), f32 bias / accumulator.
    xb = x.astype(jnp.bfloat16)
    wb = jnp.transpose(w_oi).astype(jnp.bfloat16)            # (K, N)
    bb = b.astype(jnp.float32).reshape(1, N)

    # Pad: M -> multiple of 8 (sublane), K/N -> multiples of 128 (lane-dense).
    Mp = _round_up(M, 8)
    Kp = _round_up(K, 128)
    Np = _round_up(N, 128)
    xb = jnp.pad(xb, ((0, Mp - M), (0, Kp - K)))
    wb = jnp.pad(wb, ((0, Kp - K), (0, Np - N)))
    bb = jnp.pad(bb, ((0, 0), (0, Np - N)))

    tm = _pick_tile(Mp, (256, 128, 64, 32, 16, 8))
    tn = _pick_tile(Np, (256, 128))
    tk = _pick_tile(Kp, (1024, 768, 512, 384, 256, 128))
    grid = (Mp // tm, Np // tn, Kp // tk)

    kernel = functools.partial(_linear_kernel, apply_selu=(activation == "selu"))

    bytes_accessed = (Mp * Kp * 2 + Kp * Np * 2 + Np * 4
                      + Mp * Np * jnp.dtype(out_dtype).itemsize)
    out = pl.pallas_call(
        kernel,
        out_shape=jax.ShapeDtypeStruct((Mp, Np), out_dtype),
        grid_spec=pltpu.PrefetchScalarGridSpec(
            num_scalar_prefetch=0,
            grid=grid,
            in_specs=[
                pl.BlockSpec((tm, tk), lambda i, j, k: (i, k)),
                pl.BlockSpec((tk, tn), lambda i, j, k: (k, j)),
                pl.BlockSpec((1, tn), lambda i, j, k: (0, j)),
            ],
            out_specs=pl.BlockSpec((tm, tn), lambda i, j, k: (i, j)),
            scratch_shapes=[pltpu.VMEM((tm, tn), jnp.float32)],
        ),
        compiler_params=pltpu.CompilerParams(
            dimension_semantics=("parallel", "parallel", "arbitrary"),
            vmem_limit_bytes=64 * 1024 * 1024,
        ),
        cost_estimate=pl.CostEstimate(
            flops=2 * Mp * Kp * Np,
            transcendentals=(Mp * Np if activation == "selu" else 0),
            bytes_accessed=bytes_accessed,
        ),
    )(xb, wb, bb)

    return out[:M, :N]


# ---------------------------------------------------------------------------
# Module forward + params
# ---------------------------------------------------------------------------
def init_params(key, nb_out=28):
    """Deterministic synthetic weights in torch Linear layout (out_f, in_f)."""
    dims = [(2208, 512), (512, 128), (128, nb_out)]
    params = {}
    for idx, (fin, fout) in enumerate(dims, start=1):
        key, kw, kb = jax.random.split(key, 3)
        bound = 1.0 / (fin ** 0.5)
        params[f"w{idx}"] = jax.random.uniform(
            kw, (fout, fin), jnp.float32, minval=-bound, maxval=bound)
        params[f"b{idx}"] = jax.random.uniform(
            kb, (fout,), jnp.float32, minval=-bound, maxval=bound)
    return params


def my_densenet_dens_forward(params, x):
    """Equivalent of MyDenseNetDens.forward in eval mode. x: (B, 2208) -> (B, nb_out)."""
    h = fused_linear(x, params["w1"], params["b1"], activation="selu",
                     out_dtype=jnp.bfloat16)
    # dropout(p=0.25) -> identity in eval mode
    h = fused_linear(h, params["w2"], params["b2"], activation="selu",
                     out_dtype=jnp.bfloat16)
    # dropout(p=0.25) -> identity in eval mode
    out = fused_linear(h, params["w3"], params["b3"], activation=None,
                       out_dtype=jnp.float32)
    return out


def reference_forward(params, x):
    """Pure-JAX reference with matching bf16-input / f32-accumulate math."""
    def lin(h, w, b, act):
        hb = h.astype(jnp.bfloat16).astype(jnp.float32)
        wb = w.astype(jnp.bfloat16).astype(jnp.float32)
        y = jnp.dot(hb, wb.T, precision=jax.lax.Precision.HIGHEST,
                    preferred_element_type=jnp.float32) + b.astype(jnp.float32)
        if act:
            y = _SELU_SCALE * jnp.where(
                y > 0.0, y, _SELU_ALPHA * (jnp.exp(jnp.minimum(y, 0.0)) - 1.0))
        return y

    h = lin(x, params["w1"], params["b1"], True).astype(jnp.bfloat16)
    h = lin(h, params["w2"], params["b2"], True).astype(jnp.bfloat16)
    return lin(h, params["w3"], params["b3"], False)


if __name__ == "__main__":
    key = jax.random.PRNGKey(0)
    kx, kp = jax.random.split(key)
    x = jax.random.normal(kx, (2, 2208), jnp.float32)     # (batch, in_features)
    params = init_params(kp, nb_out=28)

    fwd = jax.jit(my_densenet_dens_forward)
    out = jax.block_until_ready(fwd(params, x))
    ref = jax.block_until_ready(reference_forward(params, x))

    assert out.shape == (2, 28), out.shape
    assert out.dtype == jnp.float32
    err = float(jnp.max(jnp.abs(out - ref)))
    assert jnp.allclose(out, ref, atol=1e-2, rtol=1e-2), err
    print("KERNEL_OK")
</pallas_src>

<mosaic_0001>
module attributes {stable_mosaic.version = 11 : i64} {
  func.func @_linear_kernel(%arg0: i32, %arg1: i32, %arg2: i32, %arg3: memref<8x768xbf16, #tpu.memory_space<vmem>>, %arg4: memref<768x256xbf16, #tpu.memory_space<vmem>>, %arg5: memref<1x256xf32, #tpu.memory_space<vmem>>, %arg6: memref<8x256xbf16, #tpu.memory_space<vmem>>, %arg7: memref<8x256xf32, #tpu.memory_space<vmem>>) attributes {dimension_semantics = [#tpu.dimension_semantics<parallel>, #tpu.dimension_semantics<parallel>, #tpu.dimension_semantics<arbitrary>], iteration_bounds = array<i64: 1, 2, 3>, scalar_prefetch = 0 : i64, scratch_operands = 1 : i64, tpu.core_type = #tpu.core_type<tc>, window_params = [{transform_indices = @transform_0, window_bounds = array<i64: 8, 768>}, {transform_indices = @transform_1, window_bounds = array<i64: 768, 256>}, {transform_indices = @transform_2, window_bounds = array<i64: 1, 256>}, {transform_indices = @transform_3, window_bounds = array<i64: 8, 256>}]} {
    %c0_i32 = arith.constant 0 : i32
    %0 = arith.cmpi eq, %arg2, %c0_i32 : i32
    %1 = arith.extui %0 : i1 to i32
    %c0_i32_0 = arith.constant 0 : i32
    %2 = arith.cmpi ne, %1, %c0_i32_0 : i32
    scf.if %2 {
      %cst_9 = arith.constant 0.000000e+00 : f32
      %12 = vector.broadcast %cst_9 : f32 to vector<8x256xf32>
      %c0_10 = arith.constant 0 : index
      %c0_11 = arith.constant 0 : index
      %13 = vector.load %arg7[%c0_10, %c0_11] : memref<8x256xf32, #tpu.memory_space<vmem>>, vector<8x256xf32>
      tpu.vector_store %arg7[%c0_10, %c0_11], %12 {strides = array<i32>} : memref<8x256xf32, #tpu.memory_space<vmem>>, vector<8x256xf32>,
    } else {
    }
    %c0 = arith.constant 0 : index
    %c0_1 = arith.constant 0 : index
    %3 = vector.load %arg7[%c0, %c0_1] : memref<8x256xf32, #tpu.memory_space<vmem>>, vector<8x256xf32>
    %c0_2 = arith.constant 0 : index
    %c0_3 = arith.constant 0 : index
    %4 = vector.load %arg3[%c0_2, %c0_3] : memref<8x768xbf16, #tpu.memory_space<vmem>>, vector<8x768xbf16>
    %c0_4 = arith.constant 0 : index
    %c0_5 = arith.constant 0 : index
    %5 = vector.load %arg4[%c0_4, %c0_5] : memref<768x256xbf16, #tpu.memory_space<vmem>>, vector<768x256xbf16>
    %cst = arith.constant dense<0.000000e+00> : vector<8x256xf32>
    %6 = tpu.matmul %4, %5, %cst {dimension_numbers = #tpu.dot_dimension_numbers<[1], [0], [0], [1], [0, 0, 1, 1], [], []>} : vector<8x768xbf16>, vector<768x256xbf16>, vector<8x256xf32> -> vector<8x256xf32>
    %7 = arith.addf %3, %6 : vector<8x256xf32>
    %c0_6 = arith.constant 0 : index
    %c0_7 = arith.constant 0 : index
    %8 = vector.load %arg7[%c0_6, %c0_7] : memref<8x256xf32, #tpu.memory_space<vmem>>, vector<8x256xf32>
    tpu.vector_store %arg7[%c0_6, %c0_7], %7 {strides = array<i32>} : memref<8x256xf32, #tpu.memory_space<vmem>>, vector<8x256xf32>,
    %c2_i32 = arith.constant 2 : i32
    %9 = arith.cmpi eq, %arg2, %c2_i32 : i32
    %10 = arith.extui %9 : i1 to i32
    %c0_i32_8 = arith.constant 0 : i32
    %11 = arith.cmpi ne, %10, %c0_i32_8 : i32
    scf.if %11 {
      %c0_9 = arith.constant 0 : index
      %c0_10 = arith.constant 0 : index
      %12 = vector.load %arg7[%c0_9, %c0_10] : memref<8x256xf32, #tpu.memory_space<vmem>>, vector<8x256xf32>
      %c0_11 = arith.constant 0 : index
      %c0_12 = arith.constant 0 : index
      %13 = vector.load %arg5[%c0_11, %c0_12] : memref<1x256xf32, #tpu.memory_space<vmem>>, vector<1x256xf32>
      %14 = vector.broadcast %13 : vector<1x256xf32> to vector<8x256xf32>
      %15 = arith.addf %12, %14 : vector<8x256xf32>
      %cst_13 = arith.constant 0.000000e+00 : f32
      %16 = vector.broadcast %cst_13 : f32 to vector<8x256xf32>
      %17 = arith.minimumf %15, %16 : vector<8x256xf32>
      %18 = math.exp %17 : vector<8x256xf32>
      %cst_14 = arith.constant 1.000000e+00 : f32
      %19 = vector.broadcast %cst_14 : f32 to vector<8x256xf32>
      %20 = arith.subf %18, %19 : vector<8x256xf32>
      %cst_15 = arith.constant 1.67326319 : f32
      %21 = vector.broadcast %cst_15 : f32 to vector<8x256xf32>
      %22 = arith.mulf %21, %20 : vector<8x256xf32>
      %cst_16 = arith.constant 0.000000e+00 : f32
      %23 = vector.broadcast %cst_16 : f32 to vector<8x256xf32>
      %24 = arith.cmpf ogt, %15, %23 : vector<8x256xf32>
      %25 = arith.select %24, %15, %22 : vector<8x256xi1>, vector<8x256xf32>
      %cst_17 = arith.constant 1.05070102 : f32
      %26 = vector.broadcast %cst_17 : f32 to vector<8x256xf32>
      %27 = arith.mulf %26, %25 : vector<8x256xf32>
      %28 = arith.truncf %27 : vector<8x256xf32> to vector<8x256xbf16>
      %c0_18 = arith.constant 0 : index
      %c0_19 = arith.constant 0 : index
      %29 = vector.load %arg6[%c0_18, %c0_19] : memref<8x256xbf16, #tpu.memory_space<vmem>>, vector<8x256xbf16>
      tpu.vector_store %arg6[%c0_18, %c0_19], %28 {strides = array<i32>} : memref<8x256xbf16, #tpu.memory_space<vmem>>, vector<8x256xbf16>,
    } else {
    }
    return
  }
  func.func @transform_0(%arg0: i32, %arg1: i32, %arg2: i32) -> (i32, i32) {
    %c0_i32 = arith.constant 0 : i32
    return %arg0, %arg2 : i32, i32
  }
  func.func @transform_1(%arg0: i32, %arg1: i32, %arg2: i32) -> (i32, i32) {
    %c0_i32 = arith.constant 0 : i32
    return %arg2, %arg1 : i32, i32
  }
  func.func @transform_2(%arg0: i32, %arg1: i32, %arg2: i32) -> (i32, i32) {
    %c0_i32 = arith.constant 0 : i32
    %c0_i32_0 = arith.constant 0 : i32
    return %c0_i32, %arg1 : i32, i32
  }
  func.func @transform_3(%arg0: i32, %arg1: i32, %arg2: i32) -> (i32, i32) {
    %c0_i32 = arith.constant 0 : i32
    return %arg0, %arg1 : i32, i32
  }
}

module attributes {stable_mosaic.version = 11 : i64} {
  func.func @_linear_kernel(%arg0: i32, %arg1: i32, %arg2: i32, %arg3: memref<8x512xbf16, #tpu.memory_space<vmem>>, %arg4: memref<512x128xbf16, #tpu.memory_space<vmem>>, %arg5: memref<1x128xf32, #tpu.memory_space<vmem>>, %arg6: memref<8x128xbf16, #tpu.memory_space<vmem>>, %arg7: memref<8x128xf32, #tpu.memory_space<vmem>>) attributes {dimension_semantics = [#tpu.dimension_semantics<parallel>, #tpu.dimension_semantics<parallel>, #tpu.dimension_semantics<arbitrary>], iteration_bounds = array<i64: 1, 1, 1>, scalar_prefetch = 0 : i64, scratch_operands = 1 : i64, tpu.core_type = #tpu.core_type<tc>, window_params = [{transform_indices = @transform_0, window_bounds = array<i64: 8, 512>}, {transform_indices = @transform_1, window_bounds = array<i64: 512, 128>}, {transform_indices = @transform_2, window_bounds = array<i64: 1, 128>}, {transform_indices = @transform_3, window_bounds = array<i64: 8, 128>}]} {
    %c0_i32 = arith.constant 0 : i32
    %0 = arith.cmpi eq, %arg2, %c0_i32 : i32
    %1 = arith.extui %0 : i1 to i32
    %c0_i32_0 = arith.constant 0 : i32
    %2 = arith.cmpi ne, %1, %c0_i32_0 : i32
    scf.if %2 {
      %cst_10 = arith.constant 0.000000e+00 : f32
      %12 = vector.broadcast %cst_10 : f32 to vector<8x128xf32>
      %c0_11 = arith.constant 0 : index
      %c0_12 = arith.constant 0 : index
      %13 = vector.load %arg7[%c0_11, %c0_12] : memref<8x128xf32, #tpu.memory_space<vmem>>, vector<8x128xf32>
      tpu.vector_store %arg7[%c0_11, %c0_12], %12 {strides = array<i32>} : memref<8x128xf32, #tpu.memory_space<vmem>>, vector<8x128xf32>,
    } else {
    }
    %c0 = arith.constant 0 : index
    %c0_1 = arith.constant 0 : index
    %3 = vector.load %arg7[%c0, %c0_1] : memref<8x128xf32, #tpu.memory_space<vmem>>, vector<8x128xf32>
    %c0_2 = arith.constant 0 : index
    %c0_3 = arith.constant 0 : index
    %4 = vector.load %arg3[%c0_2, %c0_3] : memref<8x512xbf16, #tpu.memory_space<vmem>>, vector<8x512xbf16>
    %c0_4 = arith.constant 0 : index
    %c0_5 = arith.constant 0 : index
    %5 = vector.load %arg4[%c0_4, %c0_5] : memref<512x128xbf16, #tpu.memory_space<vmem>>, vector<512x128xbf16>
    %cst = arith.constant dense<0.000000e+00> : vector<8x128xf32>
    %6 = tpu.matmul %4, %5, %cst {dimension_numbers = #tpu.dot_dimension_numbers<[1], [0], [0], [1], [0, 0, 1, 1], [], []>} : vector<8x512xbf16>, vector<512x128xbf16>, vector<8x128xf32> -> vector<8x128xf32>
    %7 = arith.addf %3, %6 : vector<8x128xf32>
    %c0_6 = arith.constant 0 : index
    %c0_7 = arith.constant 0 : index
    %8 = vector.load %arg7[%c0_6, %c0_7] : memref<8x128xf32, #tpu.memory_space<vmem>>, vector<8x128xf32>
    tpu.vector_store %arg7[%c0_6, %c0_7], %7 {strides = array<i32>} : memref<8x128xf32, #tpu.memory_space<vmem>>, vector<8x128xf32>,
    %c0_i32_8 = arith.constant 0 : i32
    %9 = arith.cmpi eq, %arg2, %c0_i32_8 : i32
    %10 = arith.extui %9 : i1 to i32
    %c0_i32_9 = arith.constant 0 : i32
    %11 = arith.cmpi ne, %10, %c0_i32_9 : i32
    scf.if %11 {
      %c0_10 = arith.constant 0 : index
      %c0_11 = arith.constant 0 : index
      %12 = vector.load %arg7[%c0_10, %c0_11] : memref<8x128xf32, #tpu.memory_space<vmem>>, vector<8x128xf32>
      %c0_12 = arith.constant 0 : index
      %c0_13 = arith.constant 0 : index
      %13 = vector.load %arg5[%c0_12, %c0_13] : memref<1x128xf32, #tpu.memory_space<vmem>>, vector<1x128xf32>
      %14 = vector.broadcast %13 : vector<1x128xf32> to vector<8x128xf32>
      %15 = arith.addf %12, %14 : vector<8x128xf32>
      %cst_14 = arith.constant 0.000000e+00 : f32
      %16 = vector.broadcast %cst_14 : f32 to vector<8x128xf32>
      %17 = arith.minimumf %15, %16 : vector<8x128xf32>
      %18 = math.exp %17 : vector<8x128xf32>
      %cst_15 = arith.constant 1.000000e+00 : f32
      %19 = vector.broadcast %cst_15 : f32 to vector<8x128xf32>
      %20 = arith.subf %18, %19 : vector<8x128xf32>
      %cst_16 = arith.constant 1.67326319 : f32
      %21 = vector.broadcast %cst_16 : f32 to vector<8x128xf32>
      %22 = arith.mulf %21, %20 : vector<8x128xf32>
      %cst_17 = arith.constant 0.000000e+00 : f32
      %23 = vector.broadcast %cst_17 : f32 to vector<8x128xf32>
      %24 = arith.cmpf ogt, %15, %23 : vector<8x128xf32>
      %25 = arith.select %24, %15, %22 : vector<8x128xi1>, vector<8x128xf32>
      %cst_18 = arith.constant 1.05070102 : f32
      %26 = vector.broadcast %cst_18 : f32 to vector<8x128xf32>
      %27 = arith.mulf %26, %25 : vector<8x128xf32>
      %28 = arith.truncf %27 : vector<8x128xf32> to vector<8x128xbf16>
      %c0_19 = arith.constant 0 : index
      %c0_20 = arith.constant 0 : index
      %29 = vector.load %arg6[%c0_19, %c0_20] : memref<8x128xbf16, #tpu.memory_space<vmem>>, vector<8x128xbf16>
      tpu.vector_store %arg6[%c0_19, %c0_20], %28 {strides = array<i32>} : memref<8x128xbf16, #tpu.memory_space<vmem>>, vector<8x128xbf16>,
    } else {
    }
    return
  }
  func.func @transform_0(%arg0: i32, %arg1: i32, %arg2: i32) -> (i32, i32) {
    %c0_i32 = arith.constant 0 : i32
    return %arg0, %arg2 : i32, i32
  }
  func.func @transform_1(%arg0: i32, %arg1: i32, %arg2: i32) -> (i32, i32) {
    %c0_i32 = arith.constant 0 : i32
    return %arg2, %arg1 : i32, i32
  }
  func.func @transform_2(%arg0: i32, %arg1: i32, %arg2: i32) -> (i32, i32) {
    %c0_i32 = arith.constant 0 : i32
    %c0_i32_0 = arith.constant 0 : i32
    return %c0_i32, %arg1 : i32, i32
  }
  func.func @transform_3(%arg0: i32, %arg1: i32, %arg2: i32) -> (i32, i32) {
    %c0_i32 = arith.constant 0 : i32
    return %arg0, %arg1 : i32, i32
  }
}

module attributes {stable_mosaic.version = 11 : i64} {
  func.func @_linear_kernel(%arg0: i32, %arg1: i32, %arg2: i32, %arg3: memref<8x128xbf16, #tpu.memory_space<vmem>>, %arg4: memref<128x128xbf16, #tpu.memory_space<vmem>>, %arg5: memref<1x128xf32, #tpu.memory_space<vmem>>, %arg6: memref<8x128xf32, #tpu.memory_space<vmem>>, %arg7: memref<8x128xf32, #tpu.memory_space<vmem>>) attributes {dimension_semantics = [#tpu.dimension_semantics<parallel>, #tpu.dimension_semantics<parallel>, #tpu.dimension_semantics<arbitrary>], iteration_bounds = array<i64: 1, 1, 1>, scalar_prefetch = 0 : i64, scratch_operands = 1 : i64, tpu.core_type = #tpu.core_type<tc>, window_params = [{transform_indices = @transform_0, window_bounds = array<i64: 8, 128>}, {transform_indices = @transform_1, window_bounds = array<i64: 128, 128>}, {transform_indices = @transform_2, window_bounds = array<i64: 1, 128>}, {transform_indices = @transform_3, window_bounds = array<i64: 8, 128>}]} {
    %c0_i32 = arith.constant 0 : i32
    %0 = arith.cmpi eq, %arg2, %c0_i32 : i32
    %1 = arith.extui %0 : i1 to i32
    %c0_i32_0 = arith.constant 0 : i32
    %2 = arith.cmpi ne, %1, %c0_i32_0 : i32
    scf.if %2 {
      %cst_10 = arith.constant 0.000000e+00 : f32
      %12 = vector.broadcast %cst_10 : f32 to vector<8x128xf32>
      %c0_11 = arith.constant 0 : index
      %c0_12 = arith.constant 0 : index
      %13 = vector.load %arg7[%c0_11, %c0_12] : memref<8x128xf32, #tpu.memory_space<vmem>>, vector<8x128xf32>
      tpu.vector_store %arg7[%c0_11, %c0_12], %12 {strides = array<i32>} : memref<8x128xf32, #tpu.memory_space<vmem>>, vector<8x128xf32>,
    } else {
    }
    %c0 = arith.constant 0 : index
    %c0_1 = arith.constant 0 : index
    %3 = vector.load %arg7[%c0, %c0_1] : memref<8x128xf32, #tpu.memory_space<vmem>>, vector<8x128xf32>
    %c0_2 = arith.constant 0 : index
    %c0_3 = arith.constant 0 : index
    %4 = vector.load %arg3[%c0_2, %c0_3] : memref<8x128xbf16, #tpu.memory_space<vmem>>, vector<8x128xbf16>
    %c0_4 = arith.constant 0 : index
    %c0_5 = arith.constant 0 : index
    %5 = vector.load %arg4[%c0_4, %c0_5] : memref<128x128xbf16, #tpu.memory_space<vmem>>, vector<128x128xbf16>
    %cst = arith.constant dense<0.000000e+00> : vector<8x128xf32>
    %6 = tpu.matmul %4, %5, %cst {dimension_numbers = #tpu.dot_dimension_numbers<[1], [0], [0], [1], [0, 0, 1, 1], [], []>} : vector<8x128xbf16>, vector<128x128xbf16>, vector<8x128xf32> -> vector<8x128xf32>
    %7 = arith.addf %3, %6 : vector<8x128xf32>
    %c0_6 = arith.constant 0 : index
    %c0_7 = arith.constant 0 : index
    %8 = vector.load %arg7[%c0_6, %c0_7] : memref<8x128xf32, #tpu.memory_space<vmem>>, vector<8x128xf32>
    tpu.vector_store %arg7[%c0_6, %c0_7], %7 {strides = array<i32>} : memref<8x128xf32, #tpu.memory_space<vmem>>, vector<8x128xf32>,
    %c0_i32_8 = arith.constant 0 : i32
    %9 = arith.cmpi eq, %arg2, %c0_i32_8 : i32
    %10 = arith.extui %9 : i1 to i32
    %c0_i32_9 = arith.constant 0 : i32
    %11 = arith.cmpi ne, %10, %c0_i32_9 : i32
    scf.if %11 {
      %c0_10 = arith.constant 0 : index
      %c0_11 = arith.constant 0 : index
      %12 = vector.load %arg7[%c0_10, %c0_11] : memref<8x128xf32, #tpu.memory_space<vmem>>, vector<8x128xf32>
      %c0_12 = arith.constant 0 : index
      %c0_13 = arith.constant 0 : index
      %13 = vector.load %arg5[%c0_12, %c0_13] : memref<1x128xf32, #tpu.memory_space<vmem>>, vector<1x128xf32>
      %14 = vector.broadcast %13 : vector<1x128xf32> to vector<8x128xf32>
      %15 = arith.addf %12, %14 : vector<8x128xf32>
      %c0_14 = arith.constant 0 : index
      %c0_15 = arith.constant 0 : index
      %16 = vector.load %arg6[%c0_14, %c0_15] : memref<8x128xf32, #tpu.memory_space<vmem>>, vector<8x128xf32>
      tpu.vector_store %arg6[%c0_14, %c0_15], %15 {strides = array<i32>} : memref<8x128xf32, #tpu.memory_space<vmem>>, vector<8x128xf32>,
    } else {
    }
    return
  }
  func.func @transform_0(%arg0: i32, %arg1: i32, %arg2: i32) -> (i32, i32) {
    %c0_i32 = arith.constant 0 : i32
    return %arg0, %arg2 : i32, i32
  }
  func.func @transform_1(%arg0: i32, %arg1: i32, %arg2: i32) -> (i32, i32) {
    %c0_i32 = arith.constant 0 : i32
    return %arg2, %arg1 : i32, i32
  }
  func.func @transform_2(%arg0: i32, %arg1: i32, %arg2: i32) -> (i32, i32) {
    %c0_i32 = arith.constant 0 : i32
    %c0_i32_0 = arith.constant 0 : i32
    return %c0_i32, %arg1 : i32, i32
  }
  func.func @transform_3(%arg0: i32, %arg1: i32, %arg2: i32) -> (i32, i32) {
    %c0_i32 = arith.constant 0 : i32
    return %arg0, %arg1 : i32, i32
  }
}

</mosaic_0001>

<bundles_post_ra>
// kernel: my_densenet_dens_forward.3
= control target key start
LH: loop header
LB: loop body
LE: loop exit
PB: predicated region body
PF: predicated region fallthrough
CT: control target
= control target key end

     0   :  { %s2444_s0 = inlined_call_operand.hbm [shape: bf16[8,2304], index: 0, kind: input, shape index: {}]   ;;  %s2445_s1 = inlined_call_operand.hbm [shape: bf16[2304,512], index: 1, kind: input, shape index: {}]   ;;  %s2446_s2 = inlined_call_operand.hbm [shape: f32[1,512], index: 2, kind: input, shape index: {}]   ;;  %s2447_s3 = inlined_call_operand.hbm [shape: bf16[8,512], index: 3, kind: output, shape index: {}]  }
   0x1   :  { %2461 = sst [smem:[#allocation20_spill]] %s2444_s0 }
   0x2   :  { %2462 = sst [smem:[#allocation21_spill]] %s2445_s1 }
   0x3   :  { %2463 = sst [smem:[#allocation22_spill]] %s2447_s3 }
   0x4   :  { %8 = vsyncpa [#allocation4], 0 }
   0x5   :  { %10 = vsyncpa [#allocation4 + $0x1], 0 }
   0x6   :  { %11 = vsyncpa [#allocation7], 0 }
   0x7   :  { %13 = vsyncpa [#allocation7 + $0x1], 0 }
   0x8   :  { %14 = vsyncpa [#allocation5], 0 }
   0x9   :  { %16 = vsyncpa [#allocation5 + $0x1], 0  ;;  %s1933_s12 = smov 0   ;;  %s1935_s13 = smov 0  }
   0xa   :  { %s1937_s14 = smov 0   ;;  %s1939_s15 = smov 0  }
   0xb   :  { %s1941_s16 = smov 0   ;;  %s1943_s17 = smov 0  }
   0xc   :  { %s1945_s18 = smov 0   ;;  %s1947_s19 = smov 0  }
   0xd   :  { %s1949_s20 = smov 0   ;;  %s1951_s21 = smov 0  }
   0xe   :  { %s1953_s22 = smov 0   ;;  %s1955_s23 = smov 0  }
   0xf   :  { %s1957_s24 = smov 0   ;;  %s1959_s25 = smov 0  }
  0x10 LB: > { %2464 = sst [smem:[#allocation14_spill]] %s1883_s20  ;;  %s34_s26 = sadd.s32 1, %s1895_s23  ;;  %s1903_s25 = sphi %s1959_s25, %s22_s25   ;;  %s1899_s24 = sphi %s1957_s24, %s2518_s24   ;;  %s1895_s23 = sphi %s1955_s23, %s2517_s23   ;;  %s1891_s22 = sphi %s1953_s22, %s2516_s22   ;;  %s1887_s21 = sphi %s1951_s21, %s2515_s21   ;;  %s1883_s20 = sphi %s1949_s20, %s2502_s20   ;;  %s1879_s19 = sphi %s1947_s19, %s2514_s19   ;;  %s1875_s18 = sphi %s1945_s18, %s2513_s18   ;;  %s1871_s17 = sphi %s1943_s17, %s2512_s17   ;;  %s1867_s16 = sphi %s1941_s16, %s2511_s16   ;;  %s1863_s15 = sphi %s1939_s15, %s2510_s15   ;;  %s1859_s14 = sphi %s1937_s14, %s2509_s14   ;;  %s1855_s13 = sphi %s1935_s13, %s2508_s13   ;;  %s1851_s12 = sphi %s1933_s12, %s2507_s12  }
  0x11   : > { %2465 = sst [smem:[#allocation15_spill]] %s1895_s23  ;;  %p2005_p0 = scmp.ge.s32.totalorder %s34_s26, 3 }
  0x12   : > { %p2451_p1 = scmp.eq.s32.totalorder %s1903_s25, 0  ;;  %p85_p2 = scmp.ne.s32.totalorder %s1871_s17, %s1867_s16 }
  0x13   : > { %s2520_s26 = smov (%p2005_p0, %s34_s26), 0  ;;  %p2450_p5 = scmp.lt.s32.totalorder %s1903_s25, 6 }
  0x14   : > { %2467 = sst [smem:[#allocation16_spill]] %s2520_s26  ;;  %p87_p3 = por %p85_p2, %p2451_p1 }
  0x15   : > { %s2449_s30 = smul.u32 384, %s1895_s23  ;;  %s190_s4 = sand.u32 1, %s1903_s25  }
  0x16   : > { %s192_s5 = sand.u32 1, %s1871_s17   ;;  %s1235_s7 = sshll.u32 %s1899_s24, 1 }
  0x17   : > { %s1362_s6 = smul.u32 768, %s192_s5  ;;  %s201_s8 = sadd.s32 %s2449_s30, %s1235_s7 }
  0x18   : > { %p2030_p6 = pnand %p2450_p5, %p87_p3  ;;  %s1237_s10 = sshll.u32 %s201_s8, 6 }
  0x19   : > { %s2469_s1 = sld [smem:[#allocation21_spill]]  ;;  %s194_s5 = scalar_lea.vmem [#allocation6], %s1362_s6 }
  0x1a   : > { %s204_s3 = sshll.u32 %s194_s5, 4  ;;  %s2042_s7 = scalar_lea.sflag [#allocation7], %s190_s4  ;;  %s2039_s3 = int_to_ptr.vmem [resolvable:$true] %s204_s3 }
  0x1b   : > { %p1661_p9 = pneg %p2030_p6 }
  0x1f   : > { %s2037_s27 = scalar_lea.hbm %s2469_s1, %s1237_s10  ;;  %s1664_s10 = scalar_lea.hbm %s2469_s1, 73728 }
  0x20   : > { %s1659_s30 = scalar_lea.hbm %s2037_s27, 12288  ;;  %p1665_p12 = scmp.lt.u32.totalorder %s2037_s27, %s2469_s1 }
  0x21   : > { %p1660_p8 = scmp.ne.s32.totalorder %s2037_s27, %s1659_s30  ;;  %p1666_p13 = scmp.lt.u32.totalorder %s1664_s10, %s1659_s30 }
  0x22   : > { %p1668_p3 = scmp.lt.u32.totalorder %s1659_s30, %s2037_s27 }
  0x23   : > { %p1662_p10 = pnand %p1661_p9, %p1660_p8  ;;  %p1667_p2 = por %p1666_p13, %p1665_p12 }
  0x25   : > { %p1663_p11 = pneg %p1662_p10  ;;  %p1669_p5 = por %p1668_p3, %p1667_p2 }
  0x27   : > { %p1670_p4 = pnand %p1669_p5, %p1663_p11 }
  0x29   : > { %1673 = shalt.err (!%p1670_p4)
}
  0x2a   : > { %s1674_s4 = scalar_lea.vmem %s2039_s3, 12288  ;;  %s1905_s5 = smov [#allocation6]  }
  0x2b   : > { %p1675_p8 = scmp.ne.s32.totalorder %s2039_s3, %s1674_s4  ;;  %s1679_s29 = sshll.u32 %s1905_s5, 4  ;;  %s1680_s29 = int_to_ptr.vmem [resolvable:$false] %s1679_s29 }
  0x2c   : > { %s1681_s8 = scalar_lea.vmem %s1680_s29, 24576  ;;  %p1682_p7 = scmp.lt.s32.totalorder %s2039_s3, %s1680_s29 }
  0x2d   : > { %p1677_p10 = pnand %p1675_p8, %p1661_p9  ;;  %p1683_p12 = scmp.lt.s32.totalorder %s1681_s8, %s1674_s4 }
  0x2f   : > { %p1678_p1 = pneg %p1677_p10  ;;  %p1684_p13 = por %p1683_p12, %p1682_p7 }
  0x31   : > { %p1685_p2 = pnand %p1684_p13, %p1678_p1 }
  0x33   : > { %1688 = shalt.err (!%p1685_p2)
}
  0x34   : > { %s1906_s30 = smov 256   ;;  %s1907_s10 = smov 128  }
  0x35   : > { %s1908_s11 = smov 8   ;;  %p231_p1 = scmp.lt.s32.totalorder %s1903_s25, 7 }
  0x36   : > { %1379 = dma.hbm_to_vmem [thread:$0]  (!%p2030_p6), %s2037_s27, 12288, %s2039_s3, %s2042_s7, %s1906_s30, %s1907_s10, %s1908_s11  }
  0x37   : > { %p2470_p4 = scmp.ge.s32.totalorder %s1903_s25, 1  ;;  %s2078_s4 = sadd.s32 4294967295, %s1903_s25  }
  0x38   : > { %s46_s5 = ssub.s32 %s1895_s23, %s2520_s26  ;;  %s2472_s29 = sadd.s32 1, %s1899_s24 }
  0x39   : > { %p2073_p5 = pnand %p2470_p4, %p231_p1  ;;  %s2522_s29 = smov (!%p2005_p0, %s2472_s29), %s1899_s24 }
  0x3a   : > { %p48_p6 = scmp.eq.s32.totalorder %s46_s5, 0  ;;  %s50_s3 = sadd.s32 1, %s1883_s20 }
  0x3b   : > { %s2471_s6 = scalar_select %p2073_p5, 1, 0 }
  0x3c   : > { %p39_p7 = scmp.ge.s32.totalorder %s2522_s29, 2  ;;  %p57_p9 = scmp.ne.s32.totalorder %s1883_s20, %s1879_s19 }
  0x3d   : > { %s2091_s27 = scalar_select %p48_p6, %s1883_s20, %s50_s3  }
  0x3e   : > { %s2524_s29 = smov (%p39_p7, %s2522_s29), 0  ;;  %p2475_p11 = scmp.eq.s32.totalorder %s1903_s25, 0 }
  0x3f   : > { %2473 = sst [smem:[#allocation17_spill]] %s2091_s27  ;;  %p63_p8 = scmp.ne.s32.totalorder %s1879_s19, %s1875_s18 }
  0x40   : > { %2474 = sst [smem:[#allocation18_spill]] %s2524_s29  ;;  %p59_p3 = por %p2475_p11, %p57_p9 }
  0x41   : > { %p2456_p10 = scmp.eq.s32.totalorder %s2078_s4, 0  ;;  %s2102_s28 = ssub.s32 %s1899_s24, %s2524_s29 }
  0x42   : > { %s75_s9 = sor.u32 %s2102_s28, %s46_s5  ;;  %s169_s8 = sand.u32 1, %s1883_s20  }
  0x43   : > { %p2108_p0 = por %p2456_p10, %p63_p8  ;;  %p76_p12 = scmp.eq.s32.totalorder %s75_s9, 0 }
  0x44   : > { %p2477_p13 = scmp.ne.s32.totalorder %s1867_s16, %s1863_s15  ;;  %s2479_s11 = sadd.s32 1, %s1871_s17 }
  0x45   : > { %s2476_s30 = scalar_select %p2108_p0, 1, 0 }
  0x46   : > { %p2117_p2 = por %p2477_p13, %p2456_p10  ;;  %s1361_s3 = smul.u32 24, %s169_s8 }
  0x47   : > { %s2124_s18 = scalar_select %p76_p12, %s1871_s17, %s2479_s11  }
  0x48   : > { %s2478_s10 = scalar_select %p2117_p2, 1, 0 }
  0x49   : > { %2480 = sst [smem:[#allocation19_spill]] %s2124_s18  ;;  %s2481_s1 = smul.u32 384, %s1895_s23 }
  0x4a   : > { %s2482_s0 = sld [smem:[#allocation20_spill]]  ;;  %p2483_p1 = scmp.lt.s32.totalorder %s1903_s25, 6 }
  0x4b   : > { %s173_s9 = scalar_lea.vmem [#allocation3], %s1361_s3  ;;  %s170_s23 = scalar_lea.sflag [#allocation4], %s169_s8 }
  0x4c   : > { %p2135_p4 = pnand %p2483_p1, %p59_p3  ;;  %s183_s11 = sshll.u32 %s173_s9, 4  ;;  %s2139_s11 = int_to_ptr.vmem [resolvable:$true] %s183_s11 }
  0x4e   : > { %p1691_p7 = pneg %p2135_p4 }
  0x50   : > { %s2131_s26 = scalar_lea.hbm %s2482_s0, %s2481_s1  ;;  %s1694_s5 = scalar_lea.hbm %s2482_s0, 1152 }
  0x51   : > { %s1689_s27 = scalar_lea.hbm %s2131_s26, 384  ;;  %p1695_p3 = scmp.lt.u32.totalorder %s2131_s26, %s2482_s0 }
  0x52   : > { %p1690_p6 = scmp.ne.s32.totalorder %s2131_s26, %s1689_s27  ;;  %p1696_p8 = scmp.lt.u32.totalorder %s1694_s5, %s1689_s27 }
  0x53   : > { %p1698_p13 = scmp.lt.u32.totalorder %s1689_s27, %s2131_s26 }
  0x54   : > { %p1692_p9 = pnand %p1691_p7, %p1690_p6  ;;  %p1697_p12 = por %p1696_p8, %p1695_p3 }
  0x56   : > { %p1693_p11 = pneg %p1692_p9  ;;  %p1699_p1 = por %p1698_p13, %p1697_p12 }
  0x58   : > { %p1700_p10 = pnand %p1699_p1, %p1693_p11 }
  0x5a   : > { %1703 = shalt.err (!%p1700_p10)
}
  0x5b   : > { %s1704_s8 = scalar_lea.vmem %s2139_s11, 384  ;;  %s1909_s3 = smov [#allocation3]  }
  0x5c   : > { %p1705_p6 = scmp.ne.s32.totalorder %s2139_s11, %s1704_s8  ;;  %s1709_s9 = sshll.u32 %s1909_s3, 4  ;;  %s1710_s9 = int_to_ptr.vmem [resolvable:$false] %s1709_s9 }
  0x5d   : > { %s1711_s20 = scalar_lea.vmem %s1710_s9, 768  ;;  %p1712_p0 = scmp.lt.s32.totalorder %s2139_s11, %s1710_s9 }
  0x5e   : > { %p1707_p9 = pnand %p1705_p6, %p1691_p7  ;;  %p1713_p3 = scmp.lt.s32.totalorder %s1711_s20, %s1704_s8 }
  0x60   : > { %p1708_p2 = pneg %p1707_p9  ;;  %p1714_p8 = por %p1713_p3, %p1712_p0 }
  0x62   : > { %p1715_p12 = pnand %p1714_p8, %p1708_p2 }
  0x64   : > { %1718 = shalt.err (!%p1715_p12)
}
  0x65   : > { %1376 = dma.hbm_to_vmem [thread:$0]  (!%p2135_p4), %s2131_s26, 384, %s2139_s11, %s170_s23  }
  0x66   : > { %s1231_s27 = sadd.s32 4294967294, %s1903_s25   ;;  %p102_p10 = scmp.eq.s32.totalorder %s2102_s28, 0 }
  0x67   : > { %s104_s18 = sadd.s32 1, %s1859_s14  ;;  %p111_p0 = scmp.ne.s32.totalorder %s1859_s14, %s1855_s13 }
  0x68   : > { %p117_p2 = scmp.ne.s32.totalorder %s1855_s13, %s1851_s12  ;;  %p2485_p7 = scmp.eq.s32.totalorder %s1903_s25, 0 }
  0x69   : > { %s2174_s15 = scalar_select %p102_p10, %s1859_s14, %s104_s18  }
  0x6a   : > { %p113_p11 = por %p111_p0, %p2485_p7  ;;  %p2486_p13 = scmp.eq.s32.totalorder %s2078_s4, 0 }
  0x6b   : > { %p143_p6 = scmp.eq.s32.totalorder %s2078_s4, 5  ;;  %p149_p9 = scmp.eq.s32.totalorder %s1231_s27, 5 }
  0x6c   : > { %p2180_p1 = por %p117_p2, %p2486_p13  ;;  %s216_s29 = sand.u32 1, %s1859_s14  }
  0x6d   : > { %s1358_s5 = sshll.u32 %s1899_s24, 5  ;;  %p2187_p4 = por %p143_p6, %p111_p0 }
  0x6e   : > { %s2487_s1 = scalar_select %p2180_p1, 1, 0 }
  0x6f   : > { %s2488_s23 = scalar_select %p2187_p4, 1, 0 }
  0x70   : > { %p2191_p3 = por %p149_p9, %p117_p2  ;;  %s1238_s28 = sshll.u32 %s216_s29, 1 }
  0x71   : > { %s2198_s3 = scalar_lea.hbm %s2446_s2, %s1358_s5  ;;  %p2490_p8 = scmp.lt.s32.totalorder %s1903_s25, 6 }
  0x72   : > { %s2489_s26 = scalar_select %p2191_p3, 1, 0 }
  0x73   : > { %p2202_p12 = pnand %p2490_p8, %p113_p11  ;;  %s218_s20 = scalar_lea.vmem [#allocation8], %s1238_s28 }
  0x74   : > { %s226_s27 = sshll.u32 %s218_s20, 4  ;;  %s1719_s18 = scalar_lea.hbm %s2198_s3, 32  ;;  %s227_s27 = int_to_ptr.vmem [resolvable:$true] %s226_s27 }
  0x75   : > { %p1720_p10 = scmp.ne.s32.totalorder %s2198_s3, %s1719_s18  ;;  %p1721_p0 = pneg %p2202_p12 }
  0x76   : > { %s1724_s11 = scalar_lea.hbm %s2446_s2, 64  ;;  %p1725_p11 = scmp.lt.u32.totalorder %s2198_s3, %s2446_s2 }
  0x77   : > { %p1722_p2 = pnand %p1721_p0, %p1720_p10  ;;  %p1726_p13 = scmp.lt.u32.totalorder %s1724_s11, %s1719_s18 }
  0x78   : > { %p1728_p9 = scmp.lt.u32.totalorder %s1719_s18, %s2198_s3 }
  0x79   : > { %p1723_p7 = pneg %p1722_p2  ;;  %p1727_p6 = por %p1726_p13, %p1725_p11 }
  0x7b   : > { %p1729_p8 = por %p1728_p9, %p1727_p6 }
  0x7d   : > { %p1730_p3 = pnand %p1729_p8, %p1723_p7 }
  0x7f   : > { %1733 = shalt.err (!%p1730_p3)
}
  0x80   : > { %s1734_s28 = scalar_lea.vmem %s227_s27, 32  ;;  %s1910_s20 = smov [#allocation8]  }
  0x81   : > { %p1735_p4 = scmp.ne.s32.totalorder %s227_s27, %s1734_s28  ;;  %s1739_s29 = sshll.u32 %s1910_s20, 4  ;;  %s1740_s29 = int_to_ptr.vmem [resolvable:$false] %s1739_s29 }
  0x82   : > { %s1741_s5 = scalar_lea.vmem %s1740_s29, 64  ;;  %p1742_p1 = scmp.lt.s32.totalorder %s227_s27, %s1740_s29 }
  0x83   : > { %p1737_p10 = pnand %p1735_p4, %p1721_p0  ;;  %p1743_p5 = scmp.lt.s32.totalorder %s1741_s5, %s1734_s28 }
  0x85   : > { %p1738_p2 = pneg %p1737_p10  ;;  %p1744_p11 = por %p1743_p5, %p1742_p1 }
  0x87   : > { %p1745_p13 = pnand %p1744_p11, %p1738_p2 }
  0x89   : > { %1748 = shalt.err (!%p1745_p13)
}
  0x8a   : > { %1382 = dma.hbm_to_vmem [thread:$0]  (!%p2202_p12), %s2198_s3, 32, %s227_s27, %s2042_s7  }
  0x8b   : > { %p2492_p3 = scmp.ne.s32.totalorder %s2471_s6, 0 }
  0x8c   : > { %s237_s0 = sand.u32 (!%p2492_p3), 1, %s1879_s19   ;;  %p2493_p4 = scmp.ne.s32.totalorder (!%p2492_p3), %s2476_s30, 0 }
  0x8d   : > { %235 = sbr.rel (%p2492_p3) target bundleno = 574 (0x23e), region = 32  ;;  %s238_s11 = scalar_lea.sflag (!%p2492_p3), [#allocation4], %s237_s0 }
  0x8e   : > { %s1363_s18 = smul.u32 (!%p2492_p3), 24, %s237_s0 }
  0x90   : > { %s2231_s8 = scalar_lea.vmem (!%p2492_p3), [#allocation3], %s1363_s18 }
  0x94   : > { %1834 = dma.done.wait (%p2493_p4), %s238_s11, 384  }
  0x95   : > { %1836 = vsyncadd (%p2493_p4), %s238_s11, 4294966912  ;;  %s246_s9 = sand.u32 1, %s2078_s4   ;;  %s248_s7 = sand.u32 1, %s1867_s16  }
  0x96   : > { %s1364_s3 = smul.u32 768, %s248_s7  ;;  %s247_s6 = scalar_lea.sflag [#allocation7], %s246_s9 }
  0x97   : > { %p2494_p5 = scmp.ne.s32.totalorder %s2478_s10, 0 }
  0x98   : > { %s2239_s27 = scalar_lea.vmem [#allocation6], %s1364_s3 }
  0x99   : > { %1838 = dma.done.wait (%p2494_p5), %s247_s6, 12288  }
  0x9a   : > { %1840 = vsyncadd (%p2494_p5), %s247_s6, 4294955008  ;;  %s2246_s28 = sand.u32 1, %s1855_s13   ;;  %p2495_p1 = scmp.ne.s32.totalorder %s2487_s1, 0 }
  0x9b   : > { %s1242_s30 = sshll.u32 %s2246_s28, 1 }
  0x9c   : > { %s2249_s20 = scalar_lea.vmem [#allocation8], %s1242_s30 }
  0x9d   : > { %1842 = dma.done.wait (%p2495_p1), %s247_s6, 32  }
  0x9e   : > { %1844 = vsyncadd (%p2495_p1), %s247_s6, 4294967264  ;;  %s1243_s4 = sshll.u32 %s2246_s28, 3  ;;  %p1244_p12 = scmp.ne.s32.totalorder %s1887_s21, 0 }
  0x9f   : > { %s2256_s29 = scalar_lea.vmem [#allocation9], %s1243_s4  ;;  %v1911_v0 = vmov (!%p1244_p12), 0.0  }
  0xa0   : > { %300 = sbr.rel (%p1244_p12) target bundleno = 167 (0xa7), region = 48  ;;  %301 = vst [vmem:[#allocation2] sm:$0xff] (!%p1244_p12), %v1911_v0  ;;  %302 = vst [vmem:[#allocation2 + $0x8] sm:$0xff] (!%p1244_p12), %v1911_v0 }
  0xa7 PF: > { %v1505_v1 = vld [vmem:[%s2239_s27 + $0x4] ss:$8 sps:$4 sm:$0xff]   ;;  %v1509_v3 = vld [vmem:[%s2239_s27] ss:$8 sps:$4 sm:$0xff]   ;;  %v1511_v5 = vld [vmem:[%s2239_s27 + $0x14] ss:$8 sps:$4 sm:$0xff]  }
  0xa8   : > { %v1507_v2 = vld [vmem:[%s2239_s27 + $0x104] ss:$8 sps:$4 sm:$0xff]   ;;  %905 = vmatprep.subr.bf16.mxu0 %v1505_v1  ;;  %v1510_v4 = vld [vmem:[%s2239_s27 + $0x100] ss:$8 sps:$4 sm:$0xff]   ;;  %v1513_v6 = vld [vmem:[%s2239_s27 + $0x114] ss:$8 sps:$4 sm:$0xff]  }
  0xa9   : > { %946 = vmatprep.subr.bf16.mxu1 %v1507_v2  ;;  %906 = vmatpush1.bf16.msra.mxu0 %v1509_v3  ;;  %v1515_v7 = vld [vmem:[%s2239_s27 + $0x10] ss:$8 sps:$4 sm:$0xff]   ;;  %v1517_v9 = vld [vmem:[%s2239_s27 + $0x24] ss:$8 sps:$4 sm:$0xff]   ;;  %v1521_v11 = vld [vmem:[%s2239_s27 + $0x20] ss:$8 sps:$4 sm:$0xff]  }
  0xaa   : > { %947 = vmatpush1.bf16.msra.mxu1 %v1510_v4  ;;  %907 = vmatprep.subr.bf16.mxu0 %v1511_v5  ;;  %v1516_v8 = vld [vmem:[%s2239_s27 + $0x110] ss:$8 sps:$4 sm:$0xff]   ;;  %v1519_v10 = vld [vmem:[%s2239_s27 + $0x124] ss:$8 sps:$4 sm:$0xff]   ;;  %v1522_v12 = vld [vmem:[%s2239_s27 + $0x120] ss:$8 sps:$4 sm:$0xff]  }
  0xab   : > { %948 = vmatprep.subr.bf16.mxu1 %v1513_v6  ;;  %v1523_v13 = vld [vmem:[%s2239_s27 + $0x34] ss:$8 sps:$4 sm:$0xff]   ;;  %v1527_v15 = vld [vmem:[%s2239_s27 + $0x30] ss:$8 sps:$4 sm:$0xff]   ;;  %v1529_v17 = vld [vmem:[%s2239_s27 + $0x44] ss:$8 sps:$4 sm:$0xff]  }
  0xac   : > { %v1525_v14 = vld [vmem:[%s2239_s27 + $0x134] ss:$8 sps:$4 sm:$0xff]   ;;  %v1528_v16 = vld [vmem:[%s2239_s27 + $0x130] ss:$8 sps:$4 sm:$0xff]   ;;  %v1531_v18 = vld [vmem:[%s2239_s27 + $0x144] ss:$8 sps:$4 sm:$0xff]  }
  0xad   : > { %908 = vmatpush1.bf16.msra.mxu0 %v1515_v7  ;;  %v1533_v19 = vld [vmem:[%s2239_s27 + $0x40] ss:$8 sps:$4 sm:$0xff]   ;;  %v1535_v21 = vld [vmem:[%s2239_s27 + $0x54] ss:$8 sps:$4 sm:$0xff]   ;;  %v1539_v23 = vld [vmem:[%s2239_s27 + $0x50] ss:$8 sps:$4 sm:$0xff]  }
  0xae   : > { %949 = vmatpush1.bf16.msra.mxu1 %v1516_v8  ;;  %909 = vmatprep.subr.bf16.mxu0 %v1517_v9  ;;  %v1534_v20 = vld [vmem:[%s2239_s27 + $0x140] ss:$8 sps:$4 sm:$0xff]   ;;  %v1537_v22 = vld [vmem:[%s2239_s27 + $0x154] ss:$8 sps:$4 sm:$0xff]   ;;  %v1540_v24 = vld [vmem:[%s2239_s27 + $0x150] ss:$8 sps:$4 sm:$0xff]  }
  0xaf   : > { %950 = vmatprep.subr.bf16.mxu1 %v1519_v10  ;;  %v1541_v25 = vld [vmem:[%s2239_s27 + $0x64] ss:$8 sps:$4 sm:$0xff]   ;;  %v1545_v27 = vld [vmem:[%s2239_s27 + $0x60] ss:$8 sps:$4 sm:$0xff]   ;;  %v1547_v29 = vld [vmem:[%s2239_s27 + $0x74] ss:$8 sps:$4 sm:$0xff]  }
  0xb0   : > { %v1543_v26 = vld [vmem:[%s2239_s27 + $0x164] ss:$8 sps:$4 sm:$0xff]   ;;  %v1546_v28 = vld [vmem:[%s2239_s27 + $0x160] ss:$8 sps:$4 sm:$0xff]   ;;  %v1549_v30 = vld [vmem:[%s2239_s27 + $0x174] ss:$8 sps:$4 sm:$0xff]  }
  0xb1   : > { %910 = vmatpush1.bf16.msra.mxu0 %v1521_v11  ;;  %v1551_v31 = vld [vmem:[%s2239_s27 + $0x70] ss:$8 sps:$4 sm:$0xff]   ;;  %v1553_v33 = vld [vmem:[%s2239_s27 + $0x84] ss:$8 sps:$4 sm:$0xff]   ;;  %v1557_v35 = vld [vmem:[%s2239_s27 + $0x80] ss:$8 sps:$4 sm:$0xff]  }
  0xb2   : > { %951 = vmatpush1.bf16.msra.mxu1 %v1522_v12  ;;  %911 = vmatprep.subr.bf16.mxu0 %v1523_v13  ;;  %v1552_v32 = vld [vmem:[%s2239_s27 + $0x170] ss:$8 sps:$4 sm:$0xff]   ;;  %v1555_v34 = vld [vmem:[%s2239_s27 + $0x184] ss:$8 sps:$4 sm:$0xff]   ;;  %v1558_v36 = vld [vmem:[%s2239_s27 + $0x180] ss:$8 sps:$4 sm:$0xff]  }
  0xb3   : > { %952 = vmatprep.subr.bf16.mxu1 %v1525_v14  ;;  %v1559_v37 = vld [vmem:[%s2239_s27 + $0x94] ss:$8 sps:$4 sm:$0xff]   ;;  %v1563_v39 = vld [vmem:[%s2239_s27 + $0x90] ss:$8 sps:$4 sm:$0xff]   ;;  %v1565_v41 = vld [vmem:[%s2239_s27 + $0xa4] ss:$8 sps:$4 sm:$0xff]  }
  0xb4   : > { %v1561_v38 = vld [vmem:[%s2239_s27 + $0x194] ss:$8 sps:$4 sm:$0xff]   ;;  %v1564_v40 = vld [vmem:[%s2239_s27 + $0x190] ss:$8 sps:$4 sm:$0xff]   ;;  %v1567_v42 = vld [vmem:[%s2239_s27 + $0x1a4] ss:$8 sps:$4 sm:$0xff]  }
  0xb5   : > { %912 = vmatpush1.bf16.msra.mxu0 %v1527_v15  ;;  %v1569_v43 = vld [vmem:[%s2239_s27 + $0xa0] ss:$8 sps:$4 sm:$0xff]   ;;  %v1571_v45 = vld [vmem:[%s2239_s27 + $0xb4] ss:$8 sps:$4 sm:$0xff]   ;;  %v1575_v50 = vld [vmem:[%s2239_s27 + $0xb0] ss:$8 sps:$4 sm:$0xff]  }
  0xb6   : > { %953 = vmatpush1.bf16.msra.mxu1 %v1528_v16  ;;  %913 = vmatprep.subr.bf16.mxu0 %v1529_v17  ;;  %v1570_v44 = vld [vmem:[%s2239_s27 + $0x1a0] ss:$8 sps:$4 sm:$0xff]   ;;  %v1573_v46 = vld [vmem:[%s2239_s27 + $0x1b4] ss:$8 sps:$4 sm:$0xff]   ;;  %v1576_v51 = vld [vmem:[%s2239_s27 + $0x1b0] ss:$8 sps:$4 sm:$0xff]  }
  0xb7   : > { %954 = vmatprep.subr.bf16.mxu1 %v1531_v18  ;;  %v305_v47 = vld [vmem:[%s2231_s8] sm:$0xff]  ;;  %v306_v49 = vld [vmem:[%s2231_s8 + $0x8] sm:$0xff]  ;;  %v2328_v9 = vld [vmem:[%s2231_s8 + $0x10] sm:$0xff]  ;;  %p1347_p0 = scmp.ne.s32.totalorder %s1887_s21, 2 }
  0xb8   : > { %v1246_v48 = vcombine.high %v305_v47, %v305_v47  ;;  %v1248_v52 = vcombine.high %v306_v49, %v306_v49  ;;  %v1577_v53 = vld [vmem:[%s2239_s27 + $0xc4] ss:$8 sps:$4 sm:$0xff]   ;;  %v1581_v55 = vld [vmem:[%s2239_s27 + $0xc0] ss:$8 sps:$4 sm:$0xff]   ;;  %v1583_v57 = vld [vmem:[%s2239_s27 + $0xd4] ss:$8 sps:$4 sm:$0xff]   ;;  %v1245_v6 = vcombine.low %v305_v47, %v305_v47  ;;  %v1247_v7 = vcombine.low %v306_v49, %v306_v49 }
  0xb9   : > { %914 = vmatpush1.bf16.msra.mxu0 %v1533_v19  ;;  %v1579_v54 = vld [vmem:[%s2239_s27 + $0x1c4] ss:$8 sps:$4 sm:$0xff]   ;;  %v1582_v56 = vld [vmem:[%s2239_s27 + $0x1c0] ss:$8 sps:$4 sm:$0xff]   ;;  %v1585_v58 = vld [vmem:[%s2239_s27 + $0x1d4] ss:$8 sps:$4 sm:$0xff]   ;;  %v1250_v11 = vcombine.high %v2328_v9, %v2328_v9 }
  0xba   : > { %955 = vmatpush1.bf16.msra.mxu1 %v1534_v20  ;;  %915 = vmatprep.subr.bf16.mxu0 %v1535_v21  ;;  %v1587_v59 = vld [vmem:[%s2239_s27 + $0xd0] ss:$8 sps:$4 sm:$0xff]   ;;  %v1589_v61 = vld [vmem:[%s2239_s27 + $0xe4] ss:$8 sps:$4 sm:$0xff]   ;;  %v1593_v63 = vld [vmem:[%s2239_s27 + $0xe0] ss:$8 sps:$4 sm:$0xff]  }
  0xbb   : > { %956 = vmatprep.subr.bf16.mxu1 %v1537_v22  ;;  %937 = vmatprep.mubr.bf16.mxu0 %v1246_v48  ;;  %v1588_v60 = vld [vmem:[%s2239_s27 + $0x1d0] ss:$8 sps:$4 sm:$0xff]   ;;  %v1591_v62 = vld [vmem:[%s2239_s27 + $0x1e4] ss:$8 sps:$4 sm:$0xff]   ;;  %v1594_v0 = vld [vmem:[%s2239_s27 + $0x1e0] ss:$8 sps:$4 sm:$0xff]  }
  0xbc   : > { %978 = vmatprep.mubr.bf16.mxu1 %v1248_v52  ;;  %v1595_v1 = vld [vmem:[%s2239_s27 + $0xf4] ss:$8 sps:$4 sm:$0xff]   ;;  %v1599_v3 = vld [vmem:[%s2239_s27 + $0xf0] ss:$8 sps:$4 sm:$0xff]   ;;  %v1607_v5 = vld [vmem:[%s2239_s27 + $0x204] ss:$8 sps:$4 sm:$0xff]  }
  0xbd   : > { %916 = vmatpush1.bf16.msra.mxu0 %v1539_v23  ;;  %v1597_v2 = vld [vmem:[%s2239_s27 + $0x1f4] ss:$8 sps:$4 sm:$0xff]   ;;  %v1600_v4 = vld [vmem:[%s2239_s27 + $0x1f0] ss:$8 sps:$4 sm:$0xff]   ;;  %v1605_v8 = vld [vmem:[%s2239_s27 + $0x200] ss:$8 sps:$4 sm:$0xff]  }
  0xbe   : > { %957 = vmatpush1.bf16.msra.mxu1 %v1540_v24  ;;  %917 = vmatprep.subr.bf16.mxu0 %v1541_v25  ;;  %v1610_v10 = vld [vmem:[%s2239_s27 + $0x214] ss:$8 sps:$4 sm:$0xff]   ;;  %v1608_v12 = vld [vmem:[%s2239_s27 + $0x210] ss:$8 sps:$4 sm:$0xff]   ;;  %v1613_v13 = vld [vmem:[%s2239_s27 + $0x224] ss:$8 sps:$4 sm:$0xff]  }
  0xbf   : > { %958 = vmatprep.subr.bf16.mxu1 %v1543_v26  ;;  %v1611_v14 = vld [vmem:[%s2239_s27 + $0x220] ss:$8 sps:$4 sm:$0xff]   ;;  %v1616_v15 = vld [vmem:[%s2239_s27 + $0x234] ss:$8 sps:$4 sm:$0xff]   ;;  %v1614_v16 = vld [vmem:[%s2239_s27 + $0x230] ss:$8 sps:$4 sm:$0xff]  }
  0xc0   : > { %v1619_v17 = vld [vmem:[%s2239_s27 + $0x244] ss:$8 sps:$4 sm:$0xff]   ;;  %v1617_v18 = vld [vmem:[%s2239_s27 + $0x240] ss:$8 sps:$4 sm:$0xff]   ;;  %v1622_v19 = vld [vmem:[%s2239_s27 + $0x254] ss:$8 sps:$4 sm:$0xff]  }
  0xc1   : > { %918 = vmatpush1.bf16.msra.mxu0 %v1545_v27  ;;  %v1620_v20 = vld [vmem:[%s2239_s27 + $0x250] ss:$8 sps:$4 sm:$0xff]   ;;  %v1625_v21 = vld [vmem:[%s2239_s27 + $0x264] ss:$8 sps:$4 sm:$0xff]   ;;  %v1623_v22 = vld [vmem:[%s2239_s27 + $0x260] ss:$8 sps:$4 sm:$0xff]  }
  0xc2   : > { %959 = vmatpush1.bf16.msra.mxu1 %v1546_v28  ;;  %919 = vmatprep.subr.bf16.mxu0 %v1547_v29  ;;  %v1628_v23 = vld [vmem:[%s2239_s27 + $0x274] ss:$8 sps:$4 sm:$0xff]   ;;  %v1626_v24 = vld [vmem:[%s2239_s27 + $0x270] ss:$8 sps:$4 sm:$0xff]   ;;  %v1631_v25 = vld [vmem:[%s2239_s27 + $0x284] ss:$8 sps:$4 sm:$0xff]  }
  0xc3   : > { %960 = vmatprep.subr.bf16.mxu1 %v1549_v30  ;;  %v1629_v26 = vld [vmem:[%s2239_s27 + $0x280] ss:$8 sps:$4 sm:$0xff]   ;;  %v1634_v27 = vld [vmem:[%s2239_s27 + $0x294] ss:$8 sps:$4 sm:$0xff]   ;;  %v1632_v28 = vld [vmem:[%s2239_s27 + $0x290] ss:$8 sps:$4 sm:$0xff]  }
  0xc4   : > { %v1637_v29 = vld [vmem:[%s2239_s27 + $0x2a4] ss:$8 sps:$4 sm:$0xff]   ;;  %v1635_v30 = vld [vmem:[%s2239_s27 + $0x2a0] ss:$8 sps:$4 sm:$0xff]  }
  0xc5   : > { %920 = vmatpush1.bf16.msra.mxu0 %v1551_v31  ;;  %v1640_v31 = vld [vmem:[%s2239_s27 + $0x2b4] ss:$8 sps:$4 sm:$0xff]   ;;  %v303_v52 = vld [vmem:[#allocation2] sm:$0xff] }
  0xc6   : > { %961 = vmatpush1.bf16.msra.mxu1 %v1552_v32  ;;  %921 = vmatprep.subr.bf16.mxu0 %v1553_v33  ;;  %v1638_v32 = vld [vmem:[%s2239_s27 + $0x2b0] ss:$8 sps:$4 sm:$0xff]   ;;  %v1643_v33 = vld [vmem:[%s2239_s27 + $0x2c4] ss:$8 sps:$4 sm:$0xff]  }
  0xc7   : > { %962 = vmatprep.subr.bf16.mxu1 %v1555_v34  ;;  %v1641_v34 = vld [vmem:[%s2239_s27 + $0x2c0] ss:$8 sps:$4 sm:$0xff]  }
  0xc9   : > { %922 = vmatpush1.bf16.msra.mxu0 %v1557_v35  ;;  %v1646_v35 = vld [vmem:[%s2239_s27 + $0x2d4] ss:$8 sps:$4 sm:$0xff]  }
  0xca   : > { %963 = vmatpush1.bf16.msra.mxu1 %v1558_v36  ;;  %923 = vmatprep.subr.bf16.mxu0 %v1559_v37  ;;  %v1644_v36 = vld [vmem:[%s2239_s27 + $0x2d0] ss:$8 sps:$4 sm:$0xff]   ;;  %v1649_v37 = vld [vmem:[%s2239_s27 + $0x2e4] ss:$8 sps:$4 sm:$0xff]  }
  0xcb   : > { %964 = vmatprep.subr.bf16.mxu1 %v1561_v38  ;;  %v1647_v38 = vld [vmem:[%s2239_s27 + $0x2e0] ss:$8 sps:$4 sm:$0xff]  }
  0xcd   : > { %924 = vmatpush1.bf16.msra.mxu0 %v1563_v39  ;;  %v1652_v39 = vld [vmem:[%s2239_s27 + $0x2f4] ss:$8 sps:$4 sm:$0xff]  }
  0xce   : > { %965 = vmatpush1.bf16.msra.mxu1 %v1564_v40  ;;  %925 = vmatprep.subr.bf16.mxu0 %v1565_v41  ;;  %v1650_v40 = vld [vmem:[%s2239_s27 + $0x2f0] ss:$8 sps:$4 sm:$0xff]   ;;  %v1249_v41 = vcombine.low %v2328_v9, %v2328_v9 }
  0xcf   : > { %966 = vmatprep.subr.bf16.mxu1 %v1567_v42 }
  0xd1   : > { %926 = vmatpush1.bf16.msra.mxu0 %v1569_v43 }
  0xd2   : > { %967 = vmatpush1.bf16.msra.mxu1 %v1570_v44  ;;  %927 = vmatprep.subr.bf16.mxu0 %v1571_v45 }
  0xd3   : > { %968 = vmatprep.subr.bf16.mxu1 %v1573_v46 }
  0xd5   : > { %928 = vmatpush1.bf16.msra.mxu0 %v1575_v50 }
  0xd6   : > { %969 = vmatpush1.bf16.msra.mxu1 %v1576_v51  ;;  %929 = vmatprep.subr.bf16.mxu0 %v1577_v53 }
  0xd7   : > { %970 = vmatprep.subr.bf16.mxu1 %v1579_v54 }
  0xd9   : > { %930 = vmatpush1.bf16.msra.mxu0 %v1581_v55  ;;  %v304_v55 = vld [vmem:[#allocation2 + $0x8] sm:$0xff] }
  0xda   : > { %971 = vmatpush1.bf16.msra.mxu1 %v1582_v56  ;;  %931 = vmatprep.subr.bf16.mxu0 %v1583_v57 }
  0xdb   : > { %972 = vmatprep.subr.bf16.mxu1 %v1585_v58 }
  0xdd   : > { %932 = vmatpush1.bf16.msra.mxu0 %v1587_v59 }
  0xde   : > { %973 = vmatpush1.bf16.msra.mxu1 %v1588_v60  ;;  %933 = vmatprep.subr.bf16.mxu0 %v1589_v61 }
  0xdf   : > { %974 = vmatprep.subr.bf16.mxu1 %v1591_v62  ;;  %v1040_v62 = vlaneseq (!%p1347_p0) }
  0xe1   : > { %934 = vmatpush1.bf16.msra.mxu0 %v1593_v63  ;;  %v1041_v63 = vshrl.u32 (!%p1347_p0), %v1040_v62, 7 }
  0xe2   : > { %975 = vmatpush1.bf16.msra.mxu1 %v1594_v0  ;;  %935 = vmatprep.subr.bf16.mxu0 %v1595_v1  ;;  %v1038_v0 = vld [vmem:[%s2249_s20] sm:$0x3] (!%p1347_p0) }
  0xe3   : > { %976 = vmatprep.subr.bf16.mxu1 %v1597_v2  ;;  %v1042_v1 = vsub.s32 (!%p1347_p0), 0, %v1041_v63  ;;  %v1046_v2 = vsub.s32 (!%p1347_p0), 1, %v1041_v63 }
  0xe5   : > { %936 = vmatpush1.bf16.msra.mxu0 %v1599_v3 }
  0xe6   : > { %977 = vmatpush1.bf16.msra.mxu1 %v1600_v4  ;;  %987 = vmatprep.subr.bf16.mxu0 %v1607_v5  ;;  %v1043_v5 = vrot.slane (!%p1347_p0), %v1038_v0, %v1042_v1 }
  0xe8   : > { %938 = vmatmul.mubr.bf16.vlgmr.msra.gmra.mrb[0].mxu0 %v1245_v6  ;;  %v1047_v6 = vrot.slane (!%p1347_p0), %v1038_v0, %v1046_v2 }
  0xe9   : > { %979 = vmatmul.mubr.bf16.vlgmr.msra.gmra.mrb[0].mxu1 %v1247_v7  ;;  %988 = vmatpush1.bf16.msra.mxu0 %v1605_v8 }
  0xea   : > { %1019 = vmatprep.mubr.bf16.mxu0 %v1250_v11  ;;  %989 = vmatprep.subr.bf16.mxu0 %v1610_v10 }
  0xed   : > { %990 = vmatpush1.bf16.msra.mxu0 %v1608_v12 }
  0xee   : > { %991 = vmatprep.subr.bf16.mxu0 %v1613_v13 }
  0xf1   : > { %992 = vmatpush1.bf16.msra.mxu0 %v1611_v14 }
  0xf2   : > { %993 = vmatprep.subr.bf16.mxu0 %v1616_v15 }
  0xf5   : > { %994 = vmatpush1.bf16.msra.mxu0 %v1614_v16 }
  0xf6   : > { %995 = vmatprep.subr.bf16.mxu0 %v1619_v17 }
  0xf9   : > { %996 = vmatpush1.bf16.msra.mxu0 %v1617_v18 }
  0xfa   : > { %997 = vmatprep.subr.bf16.mxu0 %v1622_v19 }
  0xfd   : > { %998 = vmatpush1.bf16.msra.mxu0 %v1620_v20 }
  0xfe   : > { %999 = vmatprep.subr.bf16.mxu0 %v1625_v21 }
 0x101   : > { %1000 = vmatpush1.bf16.msra.mxu0 %v1623_v22 }
 0x102   : > { %1001 = vmatprep.subr.bf16.mxu0 %v1628_v23 }
 0x105   : > { %1002 = vmatpush1.bf16.msra.mxu0 %v1626_v24 }
 0x106   : > { %1003 = vmatprep.subr.bf16.mxu0 %v1631_v25 }
 0x109   : > { %1004 = vmatpush1.bf16.msra.mxu0 %v1629_v26 }
 0x10a   : > { %1005 = vmatprep.subr.bf16.mxu0 %v1634_v27 }
 0x10d   : > { %1006 = vmatpush1.bf16.msra.mxu0 %v1632_v28 }
 0x10e   : > { %1007 = vmatprep.subr.bf16.mxu0 %v1637_v29 }
 0x111   : > { %1008 = vmatpush1.bf16.msra.mxu0 %v1635_v30 }
 0x112   : > { %1009 = vmatprep.subr.bf16.mxu0 %v1640_v31 }
 0x115   : > { %1010 = vmatpush1.bf16.msra.mxu0 %v1638_v32 }
 0x116   : > { %1011 = vmatprep.subr.bf16.mxu0 %v1643_v33 }
 0x119   : > { %1012 = vmatpush1.bf16.msra.mxu0 %v1641_v34 }
 0x11a   : > { %1013 = vmatprep.subr.bf16.mxu0 %v1646_v35 }
 0x11d   : > { %1014 = vmatpush1.bf16.msra.mxu0 %v1644_v36 }
 0x11e   : > { %1015 = vmatprep.subr.bf16.mxu0 %v1649_v37 }
 0x121   : > { %1016 = vmatpush1.bf16.msra.mxu0 %v1647_v38 }
 0x122   : > { %1017 = vmatprep.subr.bf16.mxu0 %v1652_v39 }
 0x125   : > { %1018 = vmatpush1.bf16.msra.mxu0 %v1650_v40 }
 0x128   : > { %1020 = vmatmul.mubr.bf16.vlgmr.msra.gmra.mrb[4].mxu0 %v1249_v41 }
 0x1bb   : > { %v939_v42 = vpop.f32.mrb[0].mxu0 }
 0x1bc   : > { %v980_v43 = vpop.f32.mrb[0].mxu1  ;;  %v941_v45 = vpop.f32.mrb[1].mxu0 }
 0x1bd   : > { %v981_v44 = vadd.f32 %v980_v43, %v939_v42  ;;  %v982_v46 = vpop.f32.mrb[1].mxu1  ;;  %v943_v48 = vpop.f32.mrb[2].mxu0 }
 0x1be   : > { %v983_v47 = vadd.f32 %v982_v46, %v941_v45  ;;  %v984_v49 = vpop.f32.mrb[2].mxu1  ;;  %v944_v50 = vpop.f32.mrb[3].mxu0 }
 0x1bf   : > { %v985_v51 = vpop.f32.mrb[3].mxu1 }
 0x1fb   : > { %v1021_v53 = vpop.f32.mrb[4].mxu0  ;;  %1035 = sbr.rel (%p1347_p0) target bundleno = 548 (0x224), region = 52 }
 0x1fc   : > { %v1022_v54 = vadd.f32 %v1021_v53, %v981_v44  ;;  %v1023_v56 = vpop.f32.mrb[5].mxu0 }
 0x1fd   : > { %v1024_v57 = vadd.f32 %v1023_v56, %v983_v47  ;;  %v1025_v58 = vpop.f32.mrb[6].mxu0 }
 0x1fe   : > { %v1028_v59 = vadd.f32 %v1022_v54, %v303_v52  ;;  %v1026_v60 = vpop.f32.mrb[7].mxu0 }
 0x1ff   : > { %v1029_v61 = vadd.f32 %v1024_v57, %v304_v55 }
 0x200   : > { %1030 = vst [vmem:[#allocation2] sm:$0xff] %v1028_v59 }
 0x201   : > { %1031 = vst [vmem:[#allocation2 + $0x8] sm:$0xff] %v1029_v61 }
 0x207   : > { %v1036_v3 = vld [vmem:[#allocation2] sm:$0xff] }
 0x208   : > { %v1037_v4 = vld [vmem:[#allocation2 + $0x8] sm:$0xff]  ;;  %v1050_v7 = vadd.f32 %v1043_v5, %v1036_v3 }
 0x209   : > { %v1051_v8 = vadd.f32 %v1047_v6, %v1037_v4 }
 0x20a   : > { %v1052_v9 = vmin.f32 %v1050_v7, 0.0  ;;  %vm1062_vm0 = vcmp.gt.f32.partialorder %v1050_v7, 0.0 }
 0x20b   : > { %v1053_v10 = vmin.f32 %v1051_v8, 0.0  ;;  %vm1063_vm1 = vcmp.gt.f32.partialorder %v1051_v8, 0.0 }
 0x20c   : > { %v1054_v11 = vmul.f32 1.442695, %v1052_v9 }
 0x20d   : > { %v1056_v12 = vmul.f32 1.442695, %v1053_v10 }
 0x20e   : > { %1655 = vpow2.f32 %v1054_v11 }
 0x20f   : > { %1657 = vpow2.f32 %v1056_v12 }
 0x218   : > { %v1656_v13 = vpop.eup %1655 }
 0x219   : > { %v1658_v14 = vpop.eup %1657  ;;  %v1348_v15 = vadd.f32 -1.0, %v1656_v13 }
 0x21a   : > { %v1349_v16 = vadd.f32 -1.0, %v1658_v14 }
 0x21b   : > { %v1060_v17 = vmul.f32 1.6732632, %v1348_v15 }
 0x21c   : > { %v1061_v18 = vmul.f32 1.6732632, %v1349_v16 }
 0x21d   : > { %v1064_v19 = vsel %vm1062_vm0, %v1050_v7, %v1060_v17 }
 0x21e   : > { %v1065_v20 = vsel %vm1063_vm1, %v1051_v8, %v1061_v18  ;;  %v1066_v21 = vmul.f32 1.050701, %v1064_v19 }
 0x21f   : > { %v1067_v22 = vmul.f32 1.050701, %v1065_v20 }
 0x221   : > { %v1359_v23 = vpack.c.bf16 %v1067_v22, %v1066_v21 }
 0x223   : > { %1076 = vst [vmem:[%s2256_s29] sm:$0xff] %v1359_v23 }
 0x224 PF: > { %s1360_s21 = sshll.u32 %s1891_s22, 7  ;;  %s2496_s5 = sld [smem:[#allocation22_spill]] }
 0x225   : > { %s1094_s18 = sshll.u32 %s2256_s29, 4  ;;  %s1078_s11 = scalar_lea.sflag [#allocation5], %s2246_s28  ;;  %s1095_s18 = int_to_ptr.vmem [resolvable:$true] %s1094_s18 }
 0x226   : > { %s1749_s8 = scalar_lea.vmem %s1095_s18, 128  ;;  %p2497_p6 = scmp.ne.s32.totalorder %s2488_s23, 0 }
 0x227   : > { %p1750_p7 = scmp.ne.s32.totalorder %s1095_s18, %s1749_s8  ;;  %s1912_s9 = smov [#allocation9]  }
 0x228   : > { %s1753_s7 = sshll.u32 %s1912_s9, 4  ;;  %s1754_s7 = int_to_ptr.vmem [resolvable:$false] %s1753_s7 }
 0x229   : > { %p1751_p9 = pnand %p1750_p7, %p2497_p6  ;;  %s1755_s3 = scalar_lea.vmem %s1754_s7, 256 }
 0x22a   : > { %s2371_s0 = scalar_lea.hbm %s2496_s5, %s1360_s21  ;;  %p1756_p10 = scmp.lt.s32.totalorder %s1095_s18, %s1754_s7 }
 0x22b   : > { %p1752_p8 = pneg %p1751_p9  ;;  %p1757_p2 = scmp.lt.s32.totalorder %s1755_s3, %s1749_s8 }
 0x22d   : > { %p1758_p11 = por %p1757_p2, %p1756_p10 }
 0x22f   : > { %p1759_p13 = pnand %p1758_p11, %p1752_p8 }
 0x231   : > { %1762 = shalt.err (!%p1759_p13)
}
 0x232   : > { %s1763_s22 = scalar_lea.hbm %s2371_s0, 128  ;;  %s1767_s28 = scalar_lea.hbm %s2496_s5, 256 }
 0x233   : > { %p1764_p3 = scmp.ne.s32.totalorder %s2371_s0, %s1763_s22  ;;  %p1768_p1 = scmp.lt.u32.totalorder %s2371_s0, %s2496_s5 }
 0x234   : > { %p1769_p12 = scmp.lt.u32.totalorder %s1767_s28, %s1763_s22  ;;  %p1771_p7 = scmp.lt.u32.totalorder %s1763_s22, %s2371_s0 }
 0x235   : > { %p1765_p4 = pnand %p1764_p3, %p2497_p6 }
 0x236   : > { %p1770_p0 = por %p1769_p12, %p1768_p1 }
 0x237   : > { %p1766_p5 = pneg %p1765_p4 }
 0x238   : > { %p1772_p9 = por %p1771_p7, %p1770_p0 }
 0x23a   : > { %p1773_p8 = pnand %p1772_p9, %p1766_p5 }
 0x23c   : > { %1776 = shalt.err (!%p1773_p8)
}
 0x23d   : > { %1371 = dma.vmem_to_hbm [thread:$0]  (%p2497_p6), %s1095_s18, 128, %s2371_s0, %s1078_s11  }
 0x23e PF: > { %p1388_p10 = scmp.ge.s32.totalorder %s1903_s25, 2  ;;  %s1106_s4 = sand.u32 1, %s1851_s12  }
 0x23f   : > { %p2498_p2 = scmp.ne.s32.totalorder %s2489_s26, 0  ;;  %s1107_s29 = scalar_lea.sflag [#allocation5], %s1106_s4 }
 0x241   : > { %p1384_p11 = pnand %p1388_p10, %p2498_p2 }
 0x243   : > { %1846 = dma.done.wait (!%p1384_p11), %s1107_s29, 128  }
 0x244   : > { %1848 = vsyncadd (!%p1384_p11), %s1107_s29, 4294967168  ;;  %s22_s25 = sadd.s32 1, %s1903_s25   ;;  %s2500_s23 = sld [smem:[#allocation19_spill]] }
 0x245   : > { %p2397_p13 = scmp.ge.s32.totalorder %s22_s25, 8   ;;  %s2501_s10 = sld [smem:[#allocation14_spill]] }
 0x246   : > { %s2502_s20 = sld [smem:[#allocation17_spill]]  ;;  %s2503_s26 = sld [smem:[#allocation15_spill]] }
 0x247   : > { %s2504_s1 = sld [smem:[#allocation16_spill]]  ;;  %s2505_s0 = sld [smem:[#allocation18_spill]] }
 0x248   : > { %s2507_s12 = smov %s1855_s13  ;;  %s2508_s13 = smov %s1859_s14 }
 0x249   : > { %s2509_s14 = smov %s2174_s15  ;;  %s2510_s15 = smov %s1867_s16 }
 0x24a   : > { %s2511_s16 = smov %s1871_s17  ;;  %s2512_s17 = smov %s2500_s23 }
 0x24b   : > { %s2513_s18 = smov %s1879_s19  ;;  %s2514_s19 = smov %s2501_s10 }
 0x24c   : > { %s2515_s21 = smov %s2503_s26  ;;  %s2516_s22 = smov %s1899_s24 }
 0x24d   : > { %s2517_s23 = smov %s2504_s1  ;;  %s2518_s24 = smov %s2505_s0 }
 0x24e   :  { %21 = sbr.rel (!%p2397_p13) target bundleno = 16 (0x10), region = 109 }
 0x255   :  { %1112 = vsyncpa [#allocation4], 1 }
 0x256   :  { %1114 = vsyncpa [#allocation4 + $0x1], 1 }
 0x257   :  { %1115 = vsyncpa [#allocation7], 1 }
 0x258   :  { %1117 = vsyncpa [#allocation7 + $0x1], 1 }
 0x259   :  { %1118 = vsyncpa [#allocation5], 1 }
 0x25a   :  { %1120 = vsyncpa [#allocation5 + $0x1], 1 }

// kernel: my_densenet_dens_forward.4
= control target key start
LH: loop header
LB: loop body
LE: loop exit
PB: predicated region body
PF: predicated region fallthrough
CT: control target
= control target key end

     0   :  { %8 = vsyncpa [#allocation4], 0  ;;  %s745_s0 = inlined_call_operand.hbm [shape: bf16[8,512], index: 0, kind: input, shape index: {}]   ;;  %s746_s1 = inlined_call_operand.hbm [shape: bf16[512,128], index: 1, kind: input, shape index: {}]   ;;  %s747_s2 = inlined_call_operand.hbm [shape: f32[1,128], index: 2, kind: input, shape index: {}]   ;;  %s748_s3 = inlined_call_operand.hbm [shape: bf16[8,128], index: 3, kind: output, shape index: {}]  }
   0x1   :  { %9 = vsyncpa [#allocation7], 0 }
   0x2   :  { %10 = vsyncpa [#allocation5], 0  ;;  %s671_s12 = smov [#allocation6]   ;;  %s577_s16 = scalar_lea.hbm %s746_s1, 4096 }
   0x3   :  { %s26_s13 = sshll.u32 %s671_s12, 4  ;;  %p578_p0 = scmp.ne.s32.totalorder %s746_s1, %s577_s16  ;;  %s27_s13 = int_to_ptr.vmem [resolvable:$true] %s26_s13 }
   0x4   :  { %p581_p1 = scmp.lt.u32.totalorder %s577_s16, %s746_s1 }
   0x6   :  { %p583_p2 = pnand %p581_p1, %p578_p0 }
   0x8   :  { %586 = shalt.err (!%p583_p2)
}
   0x9   :  { %s587_s21 = scalar_lea.vmem %s27_s13, 4096  ;;  %p592_p4 = scmp.lt.s32.totalorder %s27_s13, %s27_s13 }
   0xa   :  { %p588_p3 = scmp.ne.s32.totalorder %s27_s13, %s587_s21  ;;  %p593_p5 = scmp.lt.s32.totalorder %s587_s21, %s587_s21 }
   0xc   :  { %p594_p6 = por %p593_p5, %p592_p4 }
   0xe   :  { %p595_p7 = pnand %p594_p6, %p588_p3 }
  0x10   :  { %598 = shalt.err (!%p595_p7)
}
  0x11   :  { %s672_s22 = smov 64   ;;  %s673_s23 = smov 4  }
  0x12   :  { %32 = dma.hbm_to_vmem [thread:$0]  %s746_s1, 4096, %s27_s13, [#allocation7], %s672_s22, %s672_s22, %s673_s23  }
  0x13   :  { %s674_s26 = smov [#allocation3]   ;;  %s675_s28 = smov [#allocation8]  }
  0x14   :  { %s17_s27 = sshll.u32 %s674_s26, 4  ;;  %s39_s29 = sshll.u32 %s675_s28, 4  ;;  %s18_s27 = int_to_ptr.vmem [resolvable:$true] %s17_s27  ;;  %s40_s29 = int_to_ptr.vmem [resolvable:$true] %s39_s29 }
  0x15   :  { %s599_s5 = scalar_lea.hbm %s745_s0, 256 }
  0x16   :  { %p600_p8 = scmp.ne.s32.totalorder %s745_s0, %s599_s5  ;;  %p603_p9 = scmp.lt.u32.totalorder %s599_s5, %s745_s0 }
  0x18   :  { %p605_p10 = pnand %p603_p9, %p600_p8 }
  0x1a   :  { %608 = shalt.err (!%p605_p10)
}
  0x1b   :  { %s609_s1 = scalar_lea.vmem %s18_s27, 256  ;;  %p614_p12 = scmp.lt.s32.totalorder %s18_s27, %s18_s27 }
  0x1c   :  { %p610_p11 = scmp.ne.s32.totalorder %s18_s27, %s609_s1  ;;  %p615_p13 = scmp.lt.s32.totalorder %s609_s1, %s609_s1 }
  0x1e   :  { %p616_p0 = por %p615_p13, %p614_p12 }
  0x20   :  { %p617_p1 = pnand %p616_p0, %p610_p11 }
  0x22   :  { %620 = shalt.err (!%p617_p1)
}
  0x23   :  { %20 = dma.hbm_to_vmem [thread:$0]  %s745_s0, 256, %s18_s27, [#allocation4]  }
  0x24   :  { %s621_s14 = scalar_lea.hbm %s747_s2, 16 }
  0x25   :  { %p622_p2 = scmp.ne.s32.totalorder %s747_s2, %s621_s14  ;;  %p625_p3 = scmp.lt.u32.totalorder %s621_s14, %s747_s2 }
  0x27   :  { %p627_p4 = pnand %p625_p3, %p622_p2 }
  0x29   :  { %630 = shalt.err (!%p627_p4)
}
  0x2a   :  { %s631_s19 = scalar_lea.vmem %s40_s29, 16  ;;  %s635_s20 = scalar_lea.vmem %s40_s29, 32 }
  0x2b   :  { %p632_p5 = scmp.ne.s32.totalorder %s40_s29, %s631_s19  ;;  %p636_p6 = scmp.lt.s32.totalorder %s40_s29, %s40_s29 }
  0x2c   :  { %p637_p7 = scmp.lt.s32.totalorder %s635_s20, %s631_s19 }
  0x2e   :  { %p638_p8 = por %p637_p7, %p636_p6 }
  0x30   :  { %p639_p9 = pnand %p638_p8, %p632_p5 }
  0x32   :  { %642 = shalt.err (!%p639_p9)
}
  0x33   :  { %42 = dma.hbm_to_vmem [thread:$0]  %s747_s2, 16, %s40_s29, [#allocation7]  }
  0x34   :  { %665 = dma.done.wait [#allocation4], 256  }
  0x35   :  { %666 = vsyncadd [#allocation4], 4294967040 }
  0x36   :  { %667 = dma.done.wait [#allocation7], 4112  }
  0x37   :  { %668 = vsyncadd [#allocation7], 4294963184  ;;  %v539_v0 = vld [vmem:[#allocation6 + $0x40] sm:$0xff]   ;;  %v543_v4 = vld [vmem:[#allocation6 + $0x48] sm:$0xff]   ;;  %s676_s2 = smov [#allocation9]  }
  0x38   :  { %v540_v1 = vld [vmem:[#allocation6 + $0xc0] sm:$0xff]   ;;  %489 = vmatprep.subr.bf16.mxu0 %v539_v0  ;;  %v544_v5 = vld [vmem:[#allocation6 + $0xc8] sm:$0xff]   ;;  %v547_v8 = vld [vmem:[#allocation6 + $0x50] sm:$0xff]   ;;  %s441_s22 = sshll.u32 %s676_s2, 4  ;;  %s442_s22 = int_to_ptr.vmem [resolvable:$true] %s441_s22 }
  0x39   :  { %v541_v2 = vld [vmem:[#allocation6] sm:$0xff]   ;;  %511 = vmatprep.subr.bf16.mxu1 %v540_v1  ;;  %v545_v6 = vld [vmem:[#allocation6 + $0x8] sm:$0xff]   ;;  %v548_v9 = vld [vmem:[#allocation6 + $0xd0] sm:$0xff]   ;;  %s643_s23 = scalar_lea.vmem %s442_s22, 64  ;;  %p648_p11 = scmp.lt.s32.totalorder %s442_s22, %s442_s22 }
  0x3a   :  { %v542_v3 = vld [vmem:[#allocation6 + $0x80] sm:$0xff]   ;;  %490 = vmatpush3.bf16.msra.mxu0 %v541_v2  ;;  %v546_v7 = vld [vmem:[#allocation6 + $0x88] sm:$0xff]   ;;  %v549_v10 = vld [vmem:[#allocation6 + $0x10] sm:$0xff]   ;;  %p644_p10 = scmp.ne.s32.totalorder %s442_s22, %s643_s23  ;;  %p649_p12 = scmp.lt.s32.totalorder %s643_s23, %s643_s23 }
  0x3b   :  { %512 = vmatpush3.bf16.msra.mxu1 %v542_v3  ;;  %491 = vmatprep.subr.bf16.mxu0 %v543_v4  ;;  %v550_v11 = vld [vmem:[#allocation6 + $0x90] sm:$0xff]   ;;  %v551_v12 = vld [vmem:[#allocation6 + $0x58] sm:$0xff]   ;;  %v555_v16 = vld [vmem:[#allocation6 + $0x60] sm:$0xff]  }
  0x3c   :  { %513 = vmatprep.subr.bf16.mxu1 %v544_v5  ;;  %v552_v13 = vld [vmem:[#allocation6 + $0xd8] sm:$0xff]   ;;  %v556_v17 = vld [vmem:[#allocation6 + $0xe0] sm:$0xff]   ;;  %v559_v20 = vld [vmem:[#allocation6 + $0x68] sm:$0xff]   ;;  %p650_p13 = por %p649_p12, %p648_p11 }
  0x3d   :  { %v553_v14 = vld [vmem:[#allocation6 + $0x18] sm:$0xff]   ;;  %v557_v18 = vld [vmem:[#allocation6 + $0x20] sm:$0xff]   ;;  %v560_v21 = vld [vmem:[#allocation6 + $0xe8] sm:$0xff]  }
  0x3e   :  { %492 = vmatpush3.bf16.msra.mxu0 %v545_v6  ;;  %v554_v15 = vld [vmem:[#allocation6 + $0x98] sm:$0xff]   ;;  %v558_v19 = vld [vmem:[#allocation6 + $0xa0] sm:$0xff]   ;;  %v561_v22 = vld [vmem:[#allocation6 + $0x28] sm:$0xff]   ;;  %p651_p0 = pnand %p650_p13, %p644_p10 }
  0x3f   :  { %514 = vmatpush3.bf16.msra.mxu1 %v546_v7  ;;  %493 = vmatprep.subr.bf16.mxu0 %v547_v8  ;;  %v562_v23 = vld [vmem:[#allocation6 + $0xa8] sm:$0xff]   ;;  %v563_v24 = vld [vmem:[#allocation6 + $0x70] sm:$0xff]   ;;  %v567_v28 = vld [vmem:[#allocation6 + $0x78] sm:$0xff]  }
  0x40   :  { %515 = vmatprep.subr.bf16.mxu1 %v548_v9  ;;  %v564_v25 = vld [vmem:[#allocation6 + $0xf0] sm:$0xff]   ;;  %v568_v29 = vld [vmem:[#allocation6 + $0xf8] sm:$0xff]   ;;  %v487_v46 = vld [vmem:[#allocation8] ss:$0 sm:$0xff] }
  0x41   :  { %v565_v26 = vld [vmem:[#allocation6 + $0x30] sm:$0xff]   ;;  %v569_v30 = vld [vmem:[#allocation6 + $0x38] sm:$0xff]  }
  0x42   :  { %494 = vmatpush3.bf16.msra.mxu0 %v549_v10  ;;  %v566_v27 = vld [vmem:[#allocation6 + $0xb0] sm:$0xff]   ;;  %v570_v31 = vld [vmem:[#allocation6 + $0xb8] sm:$0xff]  }
  0x43   :  { %516 = vmatpush3.bf16.msra.mxu1 %v550_v11  ;;  %495 = vmatprep.subr.bf16.mxu0 %v551_v12  ;;  %v59_v32 = vld [vmem:[#allocation3] sm:$0xff]  ;;  %v60_v33 = vld [vmem:[#allocation3 + $0x8] sm:$0xff] }
  0x44   :  { %517 = vmatprep.subr.bf16.mxu1 %v552_v13  ;;  %v451_v34 = vcombine.low %v59_v32, %v59_v32  ;;  %v452_v35 = vcombine.high %v59_v32, %v59_v32  ;;  %v453_v36 = vcombine.low %v60_v33, %v60_v33  ;;  %v454_v37 = vcombine.high %v60_v33, %v60_v33 }
  0x46   :  { %496 = vmatpush3.bf16.msra.mxu0 %v553_v14  ;;  %363 = vmatprep.mubr.bf16.mxu0 %v452_v35 }
  0x47   :  { %518 = vmatpush3.bf16.msra.mxu1 %v554_v15  ;;  %497 = vmatprep.subr.bf16.mxu0 %v555_v16 }
  0x48   :  { %519 = vmatprep.subr.bf16.mxu1 %v556_v17  ;;  %403 = vmatprep.mubr.bf16.mxu1 %v454_v37 }
  0x4a   :  { %498 = vmatpush3.bf16.msra.mxu0 %v557_v18 }
  0x4b   :  { %520 = vmatpush3.bf16.msra.mxu1 %v558_v19  ;;  %499 = vmatprep.subr.bf16.mxu0 %v559_v20 }
  0x4c   :  { %521 = vmatprep.subr.bf16.mxu1 %v560_v21 }
  0x4e   :  { %500 = vmatpush3.bf16.msra.mxu0 %v561_v22 }
  0x4f   :  { %522 = vmatpush3.bf16.msra.mxu1 %v562_v23  ;;  %501 = vmatprep.subr.bf16.mxu0 %v563_v24 }
  0x50   :  { %523 = vmatprep.subr.bf16.mxu1 %v564_v25 }
  0x52   :  { %502 = vmatpush3.bf16.msra.mxu0 %v565_v26 }
  0x53   :  { %524 = vmatpush3.bf16.msra.mxu1 %v566_v27  ;;  %503 = vmatprep.subr.bf16.mxu0 %v567_v28 }
  0x54   :  { %525 = vmatprep.subr.bf16.mxu1 %v568_v29 }
  0x56   :  { %504 = vmatpush3.bf16.msra.mxu0 %v569_v30 }
  0x57   :  { %526 = vmatpush3.bf16.msra.mxu1 %v570_v31 }
  0x59   :  { %364 = vmatmul.mubr.bf16.vlgmr.msra.gmra.mrb[0].mxu0 %v451_v34 }
  0x5a   :  { %404 = vmatmul.mubr.bf16.vlgmr.msra.gmra.mrb[0].mxu1 %v453_v36 }
 0x12c   :  { %v505_v38 = vpop.f32.mrb[0].mxu0 }
 0x12d   :  { %v527_v39 = vpop.f32.mrb[0].mxu1  ;;  %v506_v40 = vpop.f32.mrb[1].mxu0 }
 0x12e   :  { %v528_v41 = vpop.f32.mrb[1].mxu1  ;;  %v507_v42 = vadd.f32 %v506_v40, %v505_v38  ;;  %v508_v44 = vpop.f32.mrb[2].mxu0 }
 0x12f   :  { %v529_v43 = vadd.f32 %v528_v41, %v527_v39  ;;  %v530_v45 = vpop.f32.mrb[2].mxu1  ;;  %v509_v47 = vpop.f32.mrb[3].mxu0 }
 0x130   :  { %v531_v48 = vpop.f32.mrb[3].mxu1 }
 0x131   :  { %v406_v49 = vadd.f32 %v529_v43, %v507_v42 }
 0x133   :  { %v424_v50 = vadd.f32 %v487_v46, %v406_v49 }
 0x135   :  { %v425_v51 = vmin.f32 %v424_v50, 0.0  ;;  %vm430_vm0 = vcmp.gt.f32.partialorder %v424_v50, 0.0 }
 0x137   :  { %v426_v52 = vmul.f32 1.442695, %v425_v51 }
 0x139   :  { %575 = vpow2.f32 %v426_v52 }
 0x143   :  { %v576_v53 = vpop.eup %575 }
 0x144   :  { %v488_v54 = vadd.f32 -1.0, %v576_v53 }
 0x146   :  { %v429_v55 = vmul.f32 1.6732632, %v488_v54 }
 0x148   :  { %v431_v56 = vsel %vm430_vm0, %v424_v50, %v429_v55 }
 0x149   :  { %v432_v57 = vmul.f32 1.050701, %v431_v56 }
 0x14b   :  { %v433_v58 = vpack.c.bf16 %v432_v57, %v432_v57 }
 0x14d   :  { %434 = vst [vmem:[#allocation9] sm:$0xf] %v433_v58 }
 0x14e   :  { %654 = shalt.err (!%p651_p0)
}
 0x14f   :  { %s655_s26 = scalar_lea.hbm %s748_s3, 64 }
 0x150   :  { %p656_p1 = scmp.ne.s32.totalorder %s748_s3, %s655_s26  ;;  %p659_p2 = scmp.lt.u32.totalorder %s655_s26, %s748_s3 }
 0x152   :  { %p661_p3 = pnand %p659_p2, %p656_p1 }
 0x154   :  { %664 = shalt.err (!%p661_p3)
}
 0x155   :  { %444 = dma.vmem_to_hbm [thread:$0]  %s442_s22, 64, %s748_s3, [#allocation5]  }
 0x156   :  { %669 = dma.done.wait [#allocation5], 64  }
 0x157   :  { %670 = vsyncadd [#allocation5], 4294967232 }
 0x158   :  { %448 = vsyncpa [#allocation4], 1 }
 0x159   :  { %449 = vsyncpa [#allocation7], 1 }
 0x15a   :  { %450 = vsyncpa [#allocation5], 1 }

// kernel: my_densenet_dens_forward.5
= control target key start
LH: loop header
LB: loop body
LE: loop exit
PB: predicated region body
PF: predicated region fallthrough
CT: control target
= control target key end

     0   :  { %8 = vsyncpa [#allocation4], 0  ;;  %s419_s0 = inlined_call_operand.hbm [shape: bf16[8,128], index: 0, kind: input, shape index: {}]   ;;  %s420_s1 = inlined_call_operand.hbm [shape: bf16[128,128], index: 1, kind: input, shape index: {}]   ;;  %s421_s2 = inlined_call_operand.hbm [shape: f32[1,128], index: 2, kind: input, shape index: {}]   ;;  %s422_s3 = inlined_call_operand.hbm [shape: f32[8,128], index: 3, kind: output, shape index: {}]  }
   0x1   :  { %9 = vsyncpa [#allocation7], 0 }
   0x2   :  { %10 = vsyncpa [#allocation5], 0  ;;  %s343_s12 = smov [#allocation6]   ;;  %s249_s16 = scalar_lea.hbm %s420_s1, 1024 }
   0x3   :  { %s26_s13 = sshll.u32 %s343_s12, 4  ;;  %p250_p0 = scmp.ne.s32.totalorder %s420_s1, %s249_s16  ;;  %s27_s13 = int_to_ptr.vmem [resolvable:$true] %s26_s13 }
   0x4   :  { %p253_p1 = scmp.lt.u32.totalorder %s249_s16, %s420_s1 }
   0x6   :  { %p255_p2 = pnand %p253_p1, %p250_p0 }
   0x8   :  { %258 = shalt.err (!%p255_p2)
}
   0x9   :  { %s259_s21 = scalar_lea.vmem %s27_s13, 1024  ;;  %p264_p4 = scmp.lt.s32.totalorder %s27_s13, %s27_s13 }
   0xa   :  { %p260_p3 = scmp.ne.s32.totalorder %s27_s13, %s259_s21  ;;  %p265_p5 = scmp.lt.s32.totalorder %s259_s21, %s259_s21 }
   0xc   :  { %p266_p6 = por %p265_p5, %p264_p4 }
   0xe   :  { %p267_p7 = pnand %p266_p6, %p260_p3 }
  0x10   :  { %270 = shalt.err (!%p267_p7)
}
  0x11   :  { %s344_s22 = smov 64   ;;  %s345_s23 = smov 4  }
  0x12   :  { %32 = dma.hbm_to_vmem [thread:$0]  %s420_s1, 1024, %s27_s13, [#allocation7], %s344_s22, %s344_s22, %s345_s23  }
  0x13   :  { %s346_s26 = smov [#allocation3]   ;;  %s347_s28 = smov [#allocation8]  }
  0x14   :  { %s17_s27 = sshll.u32 %s346_s26, 4  ;;  %s39_s29 = sshll.u32 %s347_s28, 4  ;;  %s18_s27 = int_to_ptr.vmem [resolvable:$true] %s17_s27  ;;  %s40_s29 = int_to_ptr.vmem [resolvable:$true] %s39_s29 }
  0x15   :  { %s271_s5 = scalar_lea.hbm %s419_s0, 64 }
  0x16   :  { %p272_p8 = scmp.ne.s32.totalorder %s419_s0, %s271_s5  ;;  %p275_p9 = scmp.lt.u32.totalorder %s271_s5, %s419_s0 }
  0x18   :  { %p277_p10 = pnand %p275_p9, %p272_p8 }
  0x1a   :  { %280 = shalt.err (!%p277_p10)
}
  0x1b   :  { %s281_s1 = scalar_lea.vmem %s18_s27, 64  ;;  %p286_p12 = scmp.lt.s32.totalorder %s18_s27, %s18_s27 }
  0x1c   :  { %p282_p11 = scmp.ne.s32.totalorder %s18_s27, %s281_s1  ;;  %p287_p13 = scmp.lt.s32.totalorder %s281_s1, %s281_s1 }
  0x1e   :  { %p288_p0 = por %p287_p13, %p286_p12 }
  0x20   :  { %p289_p1 = pnand %p288_p0, %p282_p11 }
  0x22   :  { %292 = shalt.err (!%p289_p1)
}
  0x23   :  { %20 = dma.hbm_to_vmem [thread:$0]  %s419_s0, 64, %s18_s27, [#allocation4]  }
  0x24   :  { %s293_s14 = scalar_lea.hbm %s421_s2, 16 }
  0x25   :  { %p294_p2 = scmp.ne.s32.totalorder %s421_s2, %s293_s14  ;;  %p297_p3 = scmp.lt.u32.totalorder %s293_s14, %s421_s2 }
  0x27   :  { %p299_p4 = pnand %p297_p3, %p294_p2 }
  0x29   :  { %302 = shalt.err (!%p299_p4)
}
  0x2a   :  { %s303_s19 = scalar_lea.vmem %s40_s29, 16  ;;  %s307_s20 = scalar_lea.vmem %s40_s29, 32 }
  0x2b   :  { %p304_p5 = scmp.ne.s32.totalorder %s40_s29, %s303_s19  ;;  %p308_p6 = scmp.lt.s32.totalorder %s40_s29, %s40_s29 }
  0x2c   :  { %p309_p7 = scmp.lt.s32.totalorder %s307_s20, %s303_s19 }
  0x2e   :  { %p310_p8 = por %p309_p7, %p308_p6 }
  0x30   :  { %p311_p9 = pnand %p310_p8, %p304_p5 }
  0x32   :  { %314 = shalt.err (!%p311_p9)
}
  0x33   :  { %42 = dma.hbm_to_vmem [thread:$0]  %s421_s2, 16, %s40_s29, [#allocation7]  }
  0x34   :  { %337 = dma.done.wait [#allocation4], 64  }
  0x35   :  { %338 = vsyncadd [#allocation4], 4294967232 }
  0x36   :  { %339 = dma.done.wait [#allocation7], 1040  }
  0x37   :  { %340 = vsyncadd [#allocation7], 4294966256  ;;  %v348_v0 = vmov 0.0   ;;  %vm349_vm0 = vmmov 0   ;;  %v241_v1 = vld [vmem:[#allocation6] sm:$0xff]   ;;  %v242_v2 = vld [vmem:[#allocation6 + $0x8] sm:$0xff]  }
  0x38   :  { %213 = vmatprep.subr.bf16.mxu0 %v348_v0  ;;  %229 = vmatprep.mubr.msk.bf16.mxu0 %vm349_vm0, %v348_v0  ;;  %v243_v3 = vld [vmem:[#allocation6 + $0x10] sm:$0xff]   ;;  %v244_v4 = vld [vmem:[#allocation6 + $0x18] sm:$0xff]   ;;  %v245_v5 = vld [vmem:[#allocation6 + $0x20] sm:$0xff]   ;;  %s350_s2 = smov [#allocation9]  }
  0x39   :  { %214 = vmatpush3.bf16.msra.mxu0 %v241_v1  ;;  %v246_v6 = vld [vmem:[#allocation6 + $0x28] sm:$0xff]   ;;  %v247_v7 = vld [vmem:[#allocation6 + $0x30] sm:$0xff]   ;;  %v248_v8 = vld [vmem:[#allocation6 + $0x38] sm:$0xff]   ;;  %s185_s22 = sshll.u32 %s350_s2, 4  ;;  %s186_s22 = int_to_ptr.vmem [resolvable:$true] %s185_s22 }
  0x3a   :  { %215 = vmatprep.subr.bf16.mxu0 %v348_v0  ;;  %v59_v9 = vld [vmem:[#allocation3] sm:$0xf]  ;;  %v203_v10 = vld [vmem:[#allocation8] ss:$0 sm:$0xff]  ;;  %s315_s23 = scalar_lea.vmem %s186_s22, 128  ;;  %p320_p11 = scmp.lt.s32.totalorder %s186_s22, %s186_s22 }
  0x3b   :  { %p316_p10 = scmp.ne.s32.totalorder %s186_s22, %s315_s23  ;;  %p321_p12 = scmp.lt.s32.totalorder %s315_s23, %s315_s23 }
  0x3d   :  { %216 = vmatpush3.bf16.msra.mxu0 %v242_v2  ;;  %p322_p13 = por %p321_p12, %p320_p11 }
  0x3e   :  { %217 = vmatprep.subr.bf16.mxu0 %v348_v0 }
  0x3f   :  { %p323_p0 = pnand %p322_p13, %p316_p10 }
  0x41   :  { %218 = vmatpush3.bf16.msra.mxu0 %v243_v3 }
  0x42   :  { %219 = vmatprep.subr.bf16.mxu0 %v348_v0 }
  0x45   :  { %220 = vmatpush3.bf16.msra.mxu0 %v244_v4 }
  0x46   :  { %221 = vmatprep.subr.bf16.mxu0 %v348_v0 }
  0x49   :  { %222 = vmatpush3.bf16.msra.mxu0 %v245_v5 }
  0x4a   :  { %223 = vmatprep.subr.bf16.mxu0 %v348_v0 }
  0x4d   :  { %224 = vmatpush3.bf16.msra.mxu0 %v246_v6 }
  0x4e   :  { %225 = vmatprep.subr.bf16.mxu0 %v348_v0 }
  0x51   :  { %226 = vmatpush3.bf16.msra.mxu0 %v247_v7 }
  0x52   :  { %227 = vmatprep.subr.bf16.mxu0 %v348_v0 }
  0x55   :  { %228 = vmatpush3.bf16.msra.mxu0 %v248_v8 }
  0x58   :  { %230 = vmatmul.mubr.bf16.vlgmr.msra.gmra.mrb[0].mxu0 %v59_v9 }
 0x12b   :  { %v158_v11 = vpop.f32.mrb[0].mxu0 }
 0x12c   :  { %v177_v12 = vadd.f32 %v203_v10, %v158_v11  ;;  %v231_v13 = vpop.f32.mrb[1].mxu0 }
 0x12d   :  { %v161_v14 = vpop.f32.mrb[2].mxu0 }
 0x12e   :  { %178 = vst [vmem:[#allocation9] sm:$0xff] %v177_v12  ;;  %v232_v15 = vpop.f32.mrb[3].mxu0 }
 0x12f   :  { %326 = shalt.err (!%p323_p0)
}
 0x130   :  { %s327_s26 = scalar_lea.hbm %s422_s3, 128 }
 0x131   :  { %p328_p1 = scmp.ne.s32.totalorder %s422_s3, %s327_s26  ;;  %p331_p2 = scmp.lt.u32.totalorder %s327_s26, %s422_s3 }
 0x133   :  { %p333_p3 = pnand %p331_p2, %p328_p1 }
 0x135   :  { %336 = shalt.err (!%p333_p3)
}
 0x136   :  { %188 = dma.vmem_to_hbm [thread:$0]  %s186_s22, 128, %s422_s3, [#allocation5]  }
 0x137   :  { %341 = dma.done.wait [#allocation5], 128  }
 0x138   :  { %342 = vsyncadd [#allocation5], 4294967168 }
 0x139   :  { %192 = vsyncpa [#allocation4], 1 }
 0x13a   :  { %193 = vsyncpa [#allocation7], 1 }
 0x13b   :  { %194 = vsyncpa [#allocation5], 1 }

</bundles_post_ra>
